<compile_context>
chip_gen: v7x
topology: tpu7x:2x2x1
jax: 0.10.0
libtpu: 0.0.40
codegen_flags: <defaults>
</compile_context>

<pallas_src>
import jax
import jax.numpy as jnp
from jax import lax
from jax.experimental import pallas as pl
from jax.experimental.pallas import tpu as pltpu

# ----- synthetic "BERT" config (small) -----
VOCAB = 100
HIDDEN = 32
N_LAYERS = 2
N_HEADS = 2
HEAD_DIM = HIDDEN // N_HEADS
INTERMEDIATE = 64
MAX_POS = 16
REG_HIDDEN = 128
LN_EPS = 1e-12
LANES = 128

# ----- flat weight-slab layout (rows of a (_, 128) slab) -----
# matrix slab (bf16): per layer  [wqkv(H rows) | wo(H) | w1(H) | w2(I)]  then rw1(H), rw2(128)
W_LAYER_ROWS = HIDDEN + HIDDEN + HIDDEN + INTERMEDIATE          # 160
W_RW1_OFF = N_LAYERS * W_LAYER_ROWS                             # 320
W_RW2_OFF = W_RW1_OFF + HIDDEN                                  # 352
W_ROWS = W_RW2_OFF + REG_HIDDEN                                 # 480
# vector slab (f32): emb_ln_g, emb_ln_b, per layer 8 rows, rb1, rb2
V_EMB_G, V_EMB_B = 0, 1
V_LAYER_BASE = 2
V_LAYER_ROWS = 8
V_RB1 = V_LAYER_BASE + N_LAYERS * V_LAYER_ROWS                  # 18
V_RB2 = V_RB1 + 1                                               # 19
V_ROWS = ((V_RB2 + 1 + 7) // 8) * 8                             # 24


# ---------------- fused Pallas kernel (one grid step == one batch element) ----------------

def _bert_kernel(h_ref, mask_ref, wmat_ref, vec_ref, out_ref):
    f32 = jnp.float32
    bf16 = jnp.bfloat16
    S = h_ref.shape[1]
    H, I, NH, HD = HIDDEN, INTERMEDIATE, N_HEADS, HEAD_DIM
    scale = 1.0 / (HD ** 0.5)

    def vrow(r, w):                                  # (1, w) f32 row from the vector slab
        return vec_ref[r:r + 1, 0:w]

    def layernorm(x, g, b):
        mean = jnp.mean(x, axis=-1, keepdims=True)
        var = jnp.mean((x - mean) ** 2, axis=-1, keepdims=True)
        return (x - mean) * lax.rsqrt(var + LN_EPS) * g + b

    def erf(x):
        # Abramowitz & Stegun 7.1.26, |err| < 1.5e-7 (fp32-exact GELU).
        a1, a2, a3, a4, a5 = (0.254829592, -0.284496736, 1.421413741,
                              -1.453152027, 1.061405429)
        p = 0.3275911
        sgn = jnp.where(x >= 0.0, 1.0, -1.0)
        ax = jnp.abs(x)
        t = 1.0 / (1.0 + p * ax)
        poly = ((((a5 * t + a4) * t + a3) * t + a2) * t + a1) * t
        return sgn * (1.0 - poly * jnp.exp(-ax * ax))

    def gelu_exact(x):                               # torch.nn.GELU() default (erf form)
        return 0.5 * x * (1.0 + erf(x * 0.7071067811865476))

    # embeddings were summed on the host; embedding LayerNorm here
    h = h_ref[0].astype(f32)                                     # (S, H)
    h = layernorm(h, vrow(V_EMB_G, H), vrow(V_EMB_B, H))

    # additive attention-mask bias built in-kernel: (1, S), 0 keep / -1e9 masked
    bias = (1.0 - mask_ref[0].astype(f32)) * -1e9                # (1, S)

    for l in range(N_LAYERS):
        wb = l * W_LAYER_ROWS
        vb = V_LAYER_BASE + l * V_LAYER_ROWS
        wqkv = wmat_ref[wb:wb + H, 0:3 * H]                      # bf16 (H, 3H)
        wo = wmat_ref[wb + H:wb + 2 * H, 0:H]                    # bf16 (H, H)
        w1 = wmat_ref[wb + 2 * H:wb + 3 * H, 0:I]                # bf16 (H, I)
        w2 = wmat_ref[wb + 3 * H:wb + 3 * H + I, 0:H]            # bf16 (I, H)

        # ---- multi-head self-attention: single fused QKV matmul (lane-dense) ----
        qkv = jnp.dot(h.astype(bf16), wqkv,
                      preferred_element_type=f32) + vrow(vb + 0, 3 * H)   # (S, 3H)
        ctx = []
        for hh in range(NH):                                     # heads = column slices only
            q = qkv[:, hh * HD:(hh + 1) * HD].astype(bf16)               # (S, HD)
            k = qkv[:, H + hh * HD:H + (hh + 1) * HD].astype(bf16)
            v = qkv[:, 2 * H + hh * HD:2 * H + (hh + 1) * HD].astype(bf16)
            s = lax.dot_general(q, k, (((1,), (1,)), ((), ())),
                                preferred_element_type=f32) * scale + bias  # (S, S)
            m = jnp.max(s, axis=-1, keepdims=True)
            p = jnp.exp(s - m)
            denom = jnp.sum(p, axis=-1, keepdims=True)           # >= 1 after max-subtraction
            p = p * pl.reciprocal(denom, approx=True)            # EUP slot; approx=False for parity
            ctx.append(jnp.dot(p.astype(bf16), v, preferred_element_type=f32))  # (S, HD)
        ctx_cat = jnp.concatenate(ctx, axis=1)                   # (S, H)
        attn = jnp.dot(ctx_cat.astype(bf16), wo,
                       preferred_element_type=f32) + vrow(vb + 1, H)
        h = layernorm(h + attn, vrow(vb + 2, H), vrow(vb + 3, H))

        # ---- feed-forward ----
        f = jnp.dot(h.astype(bf16), w1, preferred_element_type=f32) + vrow(vb + 4, I)
        f = gelu_exact(f)
        f = jnp.dot(f.astype(bf16), w2, preferred_element_type=f32) + vrow(vb + 5, H)
        h = layernorm(h + f, vrow(vb + 6, H), vrow(vb + 7, H))

    # ---- CLS pooling (static sublane slice) + regressor head (Dropout = identity) ----
    cls = h[0:1, :]                                              # (1, H)
    rw1 = wmat_ref[W_RW1_OFF:W_RW1_OFF + H, :]                   # bf16 (H, 128)
    rw2 = wmat_ref[W_RW2_OFF:W_RW2_OFF + REG_HIDDEN, :]          # bf16 (128, 128); only col 0 real
    x = jnp.dot(cls.astype(bf16), rw1, preferred_element_type=f32) + vrow(V_RB1, LANES)
    x = gelu_exact(x)
    x = jnp.dot(x.astype(bf16), rw2, preferred_element_type=f32) + vrow(V_RB2, LANES)
    out_ref[0] = x.astype(out_ref.dtype)                         # lane-dense (1, 128) store


# ---------------- parameters (deterministic init) ----------------

def _dense(key, din, dout):
    w = jax.random.normal(key, (din, dout), jnp.float32) * 0.02
    b = jnp.zeros((dout,), jnp.float32)
    return w, b


def init_params(key):
    keys = jax.random.split(key, 5 + N_LAYERS)
    params = {
        "word_emb": jax.random.normal(keys[0], (VOCAB, HIDDEN), jnp.float32) * 0.02,
        "pos_emb": jax.random.normal(keys[1], (MAX_POS, HIDDEN), jnp.float32) * 0.02,
        "type_emb": jax.random.normal(keys[2], (2, HIDDEN), jnp.float32) * 0.02,
        "emb_ln": (jnp.ones((HIDDEN,), jnp.float32), jnp.zeros((HIDDEN,), jnp.float32)),
    }
    layers = []
    for l in range(N_LAYERS):
        lk = jax.random.split(keys[3 + l], 6)
        layers.append(dict(
            q=_dense(lk[0], HIDDEN, HIDDEN),
            k=_dense(lk[1], HIDDEN, HIDDEN),
            v=_dense(lk[2], HIDDEN, HIDDEN),
            attn_out=_dense(lk[3], HIDDEN, HIDDEN),
            attn_ln=(jnp.ones((HIDDEN,), jnp.float32), jnp.zeros((HIDDEN,), jnp.float32)),
            ffn_in=_dense(lk[4], HIDDEN, INTERMEDIATE),
            ffn_out=_dense(lk[5], INTERMEDIATE, HIDDEN),
            ffn_ln=(jnp.ones((HIDDEN,), jnp.float32), jnp.zeros((HIDDEN,), jnp.float32)),
        ))
    params["layers"] = layers
    rk = jax.random.split(keys[3 + N_LAYERS], 2)
    params["reg1"] = _dense(rk[0], HIDDEN, REG_HIDDEN)
    params["reg2"] = _dense(rk[1], REG_HIDDEN, 1)
    return params


def pack_weights(params):
    """Pack every weight/bias into two flat (_, 128) slabs. Called ONCE at init."""
    wmat = jnp.zeros((W_ROWS, LANES), jnp.float32)
    vecs = jnp.zeros((V_ROWS, LANES), jnp.float32)

    def put_w(buf, row, mat):
        r, c = mat.shape
        return buf.at[row:row + r, :c].set(mat)

    def put_v(buf, row, vec):
        return buf.at[row, :vec.shape[0]].set(vec)

    vecs = put_v(vecs, V_EMB_G, params["emb_ln"][0])
    vecs = put_v(vecs, V_EMB_B, params["emb_ln"][1])
    for l, lyr in enumerate(params["layers"]):
        wqkv = jnp.concatenate([lyr["q"][0], lyr["k"][0], lyr["v"][0]], axis=1)   # (H, 3H)
        bqkv = jnp.concatenate([lyr["q"][1], lyr["k"][1], lyr["v"][1]], axis=0)   # (3H,)
        wb = l * W_LAYER_ROWS
        wmat = put_w(wmat, wb + 0 * HIDDEN, wqkv)
        wmat = put_w(wmat, wb + 1 * HIDDEN, lyr["attn_out"][0])
        wmat = put_w(wmat, wb + 2 * HIDDEN, lyr["ffn_in"][0])
        wmat = put_w(wmat, wb + 3 * HIDDEN, lyr["ffn_out"][0])
        vb = V_LAYER_BASE + l * V_LAYER_ROWS
        vecs = put_v(vecs, vb + 0, bqkv)
        vecs = put_v(vecs, vb + 1, lyr["attn_out"][1])
        vecs = put_v(vecs, vb + 2, lyr["attn_ln"][0])
        vecs = put_v(vecs, vb + 3, lyr["attn_ln"][1])
        vecs = put_v(vecs, vb + 4, lyr["ffn_in"][1])
        vecs = put_v(vecs, vb + 5, lyr["ffn_out"][1])
        vecs = put_v(vecs, vb + 6, lyr["ffn_ln"][0])
        vecs = put_v(vecs, vb + 7, lyr["ffn_ln"][1])
    wmat = put_w(wmat, W_RW1_OFF, params["reg1"][0])      # (H, 128)
    wmat = put_w(wmat, W_RW2_OFF, params["reg2"][0])      # (128, 1) -> column 0
    vecs = put_v(vecs, V_RB1, params["reg1"][1])
    vecs = put_v(vecs, V_RB2, params["reg2"][1])
    return wmat.astype(jnp.bfloat16), vecs                # matmul weights bf16, vectors f32


def _cost_estimate(B, S):
    per_b = 0
    for _ in range(N_LAYERS):
        per_b += 2 * S * HIDDEN * 3 * HIDDEN                       # fused QKV projection
        per_b += N_HEADS * 2 * (2 * S * S * HEAD_DIM)              # scores + context
        per_b += 2 * S * HIDDEN * HIDDEN                           # output projection
        per_b += 2 * S * HIDDEN * INTERMEDIATE                     # FFN in
        per_b += 2 * S * INTERMEDIATE * HIDDEN                     # FFN out
    per_b += 2 * HIDDEN * REG_HIDDEN + 2 * REG_HIDDEN * LANES      # regressor head
    transc = B * (N_LAYERS * (N_HEADS * S * S + S * INTERMEDIATE) + LANES)
    bytes_accessed = (B * S * HIDDEN * 4 + B * S * 4 + B * LANES * 4
                      + W_ROWS * LANES * 2 + V_ROWS * LANES * 4)
    return pl.CostEstimate(flops=B * per_b, transcendentals=transc,
                           bytes_accessed=bytes_accessed)


# ---------------- forward pass ----------------

@jax.jit
def bert_regressor_forward(embeddings, wmat, vecs, input_ids, attention_mask):
    word_emb, pos_emb, type_emb = embeddings
    B, S = input_ids.shape

    # Embedding gather is glue and stays in JAX; everything else is one fused kernel.
    # token_type_ids default to 0 (matches HF behaviour when not provided).
    h = (word_emb[input_ids]
         + pos_emb[:S][None, :, :]
         + type_emb[0][None, None, :]).astype(jnp.float32)          # (B, S, H)
    mask = attention_mask.astype(jnp.float32).reshape(B, 1, S)       # (B, 1, S)

    out = pl.pallas_call(
        _bert_kernel,
        grid=(B,),                                                   # batch-parallel (v7x: 2 TCs)
        in_specs=[
            pl.BlockSpec((1, S, HIDDEN), lambda b: (b, 0, 0)),       # activations: per-batch block
            pl.BlockSpec((1, 1, S), lambda b: (b, 0, 0)),            # mask: per-batch block
            pl.BlockSpec((W_ROWS, LANES), lambda b: (0, 0)),         # weight slab: VMEM-resident
            pl.BlockSpec((V_ROWS, LANES), lambda b: (0, 0)),         # vector slab: VMEM-resident
        ],
        out_specs=pl.BlockSpec((1, 1, LANES), lambda b: (b, 0, 0)),  # lane-dense output slab
        out_shape=jax.ShapeDtypeStruct((B, 1, LANES), jnp.float32),
        compiler_params=pltpu.CompilerParams(dimension_semantics=("parallel",)),
        cost_estimate=_cost_estimate(B, S),
    )(h, mask, wmat, vecs)

    return out[:, 0, 0]                                              # (B,)


if __name__ == "__main__":
    key = jax.random.PRNGKey(0)
    pkey, ikey = jax.random.split(key)
    params = init_params(pkey)

    # Hoisted out of the forward pass: done once at init.
    embeddings = (params["word_emb"], params["pos_emb"], params["type_emb"])
    wmat, vecs = pack_weights(params)

    B, S = 2, 8
    input_ids = jax.random.randint(ikey, (B, S), 0, VOCAB, dtype=jnp.int32)
    attention_mask = jnp.ones((B, S), jnp.int32).at[1, 6:].set(0)   # last 2 tokens of seq 1 padded

    out = bert_regressor_forward(embeddings, wmat, vecs, input_ids, attention_mask)
    out = jax.block_until_ready(out)
    assert out.shape == (B,) and out.dtype == jnp.float32
    assert bool(jnp.all(jnp.isfinite(out)))
    print("KERNEL_OK")
</pallas_src>

<mosaic_0001>
module attributes {stable_mosaic.version = 11 : i64} {
  func.func @_bert_kernel(%arg0: i32, %arg1: memref<1x8x32xf32, #tpu.memory_space<vmem>>, %arg2: memref<1x1x8xf32, #tpu.memory_space<vmem>>, %arg3: memref<480x128xbf16, #tpu.memory_space<vmem>>, %arg4: memref<24x128xf32, #tpu.memory_space<vmem>>, %arg5: memref<1x1x128xf32, #tpu.memory_space<vmem>>) attributes {dimension_semantics = [#tpu.dimension_semantics<parallel>], iteration_bounds = array<i64: 2>, scalar_prefetch = 0 : i64, scratch_operands = 0 : i64, tpu.core_type = #tpu.core_type<tc>, window_params = [{transform_indices = @transform_0, window_bounds = array<i64: 1, 8, 32>}, {transform_indices = @transform_1, window_bounds = array<i64: 1, 1, 8>}, {pipeline_mode = #tpu.pipeline_mode<synchronous>, transform_indices = @transform_2, window_bounds = array<i64: 480, 128>}, {pipeline_mode = #tpu.pipeline_mode<synchronous>, transform_indices = @transform_3, window_bounds = array<i64: 24, 128>}, {transform_indices = @transform_4, window_bounds = array<i64: 1, 1, 128>}]} {
    %c0 = arith.constant 0 : index
    %c0_0 = arith.constant 0 : index
    %c0_1 = arith.constant 0 : index
    %0 = vector.load %arg1[%c0, %c0_0, %c0_1] : memref<1x8x32xf32, #tpu.memory_space<vmem>>, vector<1x8x32xf32>
    %1 = vector.shape_cast %0 : vector<1x8x32xf32> to vector<8x32xf32>
    %c0_2 = arith.constant 0 : index
    %c0_3 = arith.constant 0 : index
    %2 = vector.load %arg4[%c0_2, %c0_3] : memref<24x128xf32, #tpu.memory_space<vmem>>, vector<1x32xf32>
    %c1 = arith.constant 1 : index
    %c0_4 = arith.constant 0 : index
    %3 = vector.load %arg4[%c1, %c0_4] : memref<24x128xf32, #tpu.memory_space<vmem>>, vector<1x32xf32>
    %cst = arith.constant dense<0.000000e+00> : vector<8xf32>
    %4 = vector.multi_reduction <add>, %1, %cst [1] : vector<8x32xf32> to vector<8xf32>
    %5 = vector.shape_cast %4 : vector<8xf32> to vector<8x1xf32>
    %cst_5 = arith.constant 3.200000e+01 : f32
    %6 = vector.broadcast %cst_5 : f32 to vector<8x1xf32>
    %7 = arith.divf %5, %6 : vector<8x1xf32>
    %8 = vector.broadcast %7 : vector<8x1xf32> to vector<8x32xf32>
    %9 = arith.subf %1, %8 : vector<8x32xf32>
    %10 = arith.mulf %9, %9 : vector<8x32xf32>
    %cst_6 = arith.constant dense<0.000000e+00> : vector<8xf32>
    %11 = vector.multi_reduction <add>, %10, %cst_6 [1] : vector<8x32xf32> to vector<8xf32>
    %12 = vector.shape_cast %11 : vector<8xf32> to vector<8x1xf32>
    %cst_7 = arith.constant 3.200000e+01 : f32
    %13 = vector.broadcast %cst_7 : f32 to vector<8x1xf32>
    %14 = arith.divf %12, %13 : vector<8x1xf32>
    %15 = vector.broadcast %7 : vector<8x1xf32> to vector<8x32xf32>
    %16 = arith.subf %1, %15 : vector<8x32xf32>
    %cst_8 = arith.constant 9.99999996E-13 : f32
    %17 = vector.broadcast %cst_8 : f32 to vector<8x1xf32>
    %18 = arith.addf %14, %17 : vector<8x1xf32>
    %19 = math.rsqrt %18 : vector<8x1xf32>
    %20 = vector.broadcast %19 : vector<8x1xf32> to vector<8x32xf32>
    %21 = arith.mulf %16, %20 : vector<8x32xf32>
    %22 = vector.broadcast %2 : vector<1x32xf32> to vector<8x32xf32>
    %23 = arith.mulf %21, %22 : vector<8x32xf32>
    %24 = vector.broadcast %3 : vector<1x32xf32> to vector<8x32xf32>
    %25 = arith.addf %23, %24 : vector<8x32xf32>
    %c0_9 = arith.constant 0 : index
    %c0_10 = arith.constant 0 : index
    %c0_11 = arith.constant 0 : index
    %26 = vector.load %arg2[%c0_9, %c0_10, %c0_11] : memref<1x1x8xf32, #tpu.memory_space<vmem>>, vector<1x1x8xf32>
    %27 = vector.shape_cast %26 : vector<1x1x8xf32> to vector<1x8xf32>
    %cst_12 = arith.constant 1.000000e+00 : f32
    %28 = vector.broadcast %cst_12 : f32 to vector<1x8xf32>
    %29 = arith.subf %28, %27 : vector<1x8xf32>
    %cst_13 = arith.constant -1.000000e+09 : f32
    %30 = vector.broadcast %cst_13 : f32 to vector<1x8xf32>
    %31 = arith.mulf %29, %30 : vector<1x8xf32>
    %c0_14 = arith.constant 0 : index
    %c0_15 = arith.constant 0 : index
    %32 = vector.load %arg3[%c0_14, %c0_15] : memref<480x128xbf16, #tpu.memory_space<vmem>>, vector<32x96xbf16>
    %c32 = arith.constant 32 : index
    %c0_16 = arith.constant 0 : index
    %33 = vector.load %arg3[%c32, %c0_16] : memref<480x128xbf16, #tpu.memory_space<vmem>>, vector<32x32xbf16>
    %c64 = arith.constant 64 : index
    %c0_17 = arith.constant 0 : index
    %34 = vector.load %arg3[%c64, %c0_17] : memref<480x128xbf16, #tpu.memory_space<vmem>>, vector<32x64xbf16>
    %c96 = arith.constant 96 : index
    %c0_18 = arith.constant 0 : index
    %35 = vector.load %arg3[%c96, %c0_18] : memref<480x128xbf16, #tpu.memory_space<vmem>>, vector<64x32xbf16>
    %36 = arith.truncf %25 : vector<8x32xf32> to vector<8x32xbf16>
    %cst_19 = arith.constant dense<0.000000e+00> : vector<8x96xf32>
    %37 = tpu.matmul %36, %32, %cst_19 {dimension_numbers = #tpu.dot_dimension_numbers<[1], [0], [0], [1], [0, 0, 1, 1], [], []>} : vector<8x32xbf16>, vector<32x96xbf16>, vector<8x96xf32> -> vector<8x96xf32>
    %c2 = arith.constant 2 : index
    %c0_20 = arith.constant 0 : index
    %38 = vector.load %arg4[%c2, %c0_20] : memref<24x128xf32, #tpu.memory_space<vmem>>, vector<1x96xf32>
    %39 = vector.broadcast %38 : vector<1x96xf32> to vector<8x96xf32>
    %40 = arith.addf %37, %39 : vector<8x96xf32>
    %41 = vector.extract_strided_slice %40 {offsets = [0, 0], sizes = [8, 16], strides = [1, 1]} : vector<8x96xf32> to vector<8x16xf32>
    %42 = arith.truncf %41 : vector<8x16xf32> to vector<8x16xbf16>
    %43 = vector.extract_strided_slice %40 {offsets = [0, 32], sizes = [8, 16], strides = [1, 1]} : vector<8x96xf32> to vector<8x16xf32>
    %44 = arith.truncf %43 : vector<8x16xf32> to vector<8x16xbf16>
    %45 = vector.extract_strided_slice %40 {offsets = [0, 64], sizes = [8, 16], strides = [1, 1]} : vector<8x96xf32> to vector<8x16xf32>
    %46 = arith.truncf %45 : vector<8x16xf32> to vector<8x16xbf16>
    %cst_21 = arith.constant dense<0.000000e+00> : vector<8x8xf32>
    %47 = tpu.matmul %42, %44, %cst_21 {dimension_numbers = #tpu.dot_dimension_numbers<[1], [1], [0], [0], [0, 0, 1, 0], [], []>} : vector<8x16xbf16>, vector<8x16xbf16>, vector<8x8xf32> -> vector<8x8xf32>
    %cst_22 = arith.constant 2.500000e-01 : f32
    %48 = vector.broadcast %cst_22 : f32 to vector<8x8xf32>
    %49 = arith.mulf %47, %48 : vector<8x8xf32>
    %50 = vector.broadcast %31 : vector<1x8xf32> to vector<8x8xf32>
    %51 = arith.addf %49, %50 : vector<8x8xf32>
    %cst_23 = arith.constant dense<0xFF800000> : vector<8xf32>
    %52 = vector.multi_reduction <maximumf>, %51, %cst_23 [1] : vector<8x8xf32> to vector<8xf32>
    %53 = vector.shape_cast %52 : vector<8xf32> to vector<8x1xf32>
    %54 = vector.broadcast %53 : vector<8x1xf32> to vector<8x8xf32>
    %55 = arith.subf %51, %54 : vector<8x8xf32>
    %56 = math.exp %55 : vector<8x8xf32>
    %cst_24 = arith.constant dense<0.000000e+00> : vector<8xf32>
    %57 = vector.multi_reduction <add>, %56, %cst_24 [1] : vector<8x8xf32> to vector<8xf32>
    %58 = vector.shape_cast %57 : vector<8xf32> to vector<8x1xf32>
    %59 = tpu.reciprocal %58 {approx = true} : vector<8x1xf32> -> vector<8x1xf32>
    %60 = vector.broadcast %59 : vector<8x1xf32> to vector<8x8xf32>
    %61 = arith.mulf %56, %60 : vector<8x8xf32>
    %62 = arith.truncf %61 : vector<8x8xf32> to vector<8x8xbf16>
    %cst_25 = arith.constant dense<0.000000e+00> : vector<8x16xf32>
    %63 = tpu.matmul %62, %46, %cst_25 {dimension_numbers = #tpu.dot_dimension_numbers<[1], [0], [0], [1], [0, 0, 1, 1], [], []>} : vector<8x8xbf16>, vector<8x16xbf16>, vector<8x16xf32> -> vector<8x16xf32>
    %64 = vector.extract_strided_slice %40 {offsets = [0, 16], sizes = [8, 16], strides = [1, 1]} : vector<8x96xf32> to vector<8x16xf32>
    %65 = arith.truncf %64 : vector<8x16xf32> to vector<8x16xbf16>
    %66 = vector.extract_strided_slice %40 {offsets = [0, 48], sizes = [8, 16], strides = [1, 1]} : vector<8x96xf32> to vector<8x16xf32>
    %67 = arith.truncf %66 : vector<8x16xf32> to vector<8x16xbf16>
    %68 = vector.extract_strided_slice %40 {offsets = [0, 80], sizes = [8, 16], strides = [1, 1]} : vector<8x96xf32> to vector<8x16xf32>
    %69 = arith.truncf %68 : vector<8x16xf32> to vector<8x16xbf16>
    %cst_26 = arith.constant dense<0.000000e+00> : vector<8x8xf32>
    %70 = tpu.matmul %65, %67, %cst_26 {dimension_numbers = #tpu.dot_dimension_numbers<[1], [1], [0], [0], [0, 0, 1, 0], [], []>} : vector<8x16xbf16>, vector<8x16xbf16>, vector<8x8xf32> -> vector<8x8xf32>
    %cst_27 = arith.constant 2.500000e-01 : f32
    %71 = vector.broadcast %cst_27 : f32 to vector<8x8xf32>
    %72 = arith.mulf %70, %71 : vector<8x8xf32>
    %73 = vector.broadcast %31 : vector<1x8xf32> to vector<8x8xf32>
    %74 = arith.addf %72, %73 : vector<8x8xf32>
    %cst_28 = arith.constant dense<0xFF800000> : vector<8xf32>
    %75 = vector.multi_reduction <maximumf>, %74, %cst_28 [1] : vector<8x8xf32> to vector<8xf32>
    %76 = vector.shape_cast %75 : vector<8xf32> to vector<8x1xf32>
    %77 = vector.broadcast %76 : vector<8x1xf32> to vector<8x8xf32>
    %78 = arith.subf %74, %77 : vector<8x8xf32>
    %79 = math.exp %78 : vector<8x8xf32>
    %cst_29 = arith.constant dense<0.000000e+00> : vector<8xf32>
    %80 = vector.multi_reduction <add>, %79, %cst_29 [1] : vector<8x8xf32> to vector<8xf32>
    %81 = vector.shape_cast %80 : vector<8xf32> to vector<8x1xf32>
    %82 = tpu.reciprocal %81 {approx = true} : vector<8x1xf32> -> vector<8x1xf32>
    %83 = vector.broadcast %82 : vector<8x1xf32> to vector<8x8xf32>
    %84 = arith.mulf %79, %83 : vector<8x8xf32>
    %85 = arith.truncf %84 : vector<8x8xf32> to vector<8x8xbf16>
    %cst_30 = arith.constant dense<0.000000e+00> : vector<8x16xf32>
    %86 = tpu.matmul %85, %69, %cst_30 {dimension_numbers = #tpu.dot_dimension_numbers<[1], [0], [0], [1], [0, 0, 1, 1], [], []>} : vector<8x8xbf16>, vector<8x16xbf16>, vector<8x16xf32> -> vector<8x16xf32>
    %87 = tpu.concatenate %63, %86 in 1 : vector<8x16xf32>, vector<8x16xf32> -> vector<8x32xf32>
    %88 = arith.truncf %87 : vector<8x32xf32> to vector<8x32xbf16>
    %cst_31 = arith.constant dense<0.000000e+00> : vector<8x32xf32>
    %89 = tpu.matmul %88, %33, %cst_31 {dimension_numbers = #tpu.dot_dimension_numbers<[1], [0], [0], [1], [0, 0, 1, 1], [], []>} : vector<8x32xbf16>, vector<32x32xbf16>, vector<8x32xf32> -> vector<8x32xf32>
    %c3 = arith.constant 3 : index
    %c0_32 = arith.constant 0 : index
    %90 = vector.load %arg4[%c3, %c0_32] : memref<24x128xf32, #tpu.memory_space<vmem>>, vector<1x32xf32>
    %91 = vector.broadcast %90 : vector<1x32xf32> to vector<8x32xf32>
    %92 = arith.addf %89, %91 : vector<8x32xf32>
    %93 = arith.addf %25, %92 : vector<8x32xf32>
    %c4 = arith.constant 4 : index
    %c0_33 = arith.constant 0 : index
    %94 = vector.load %arg4[%c4, %c0_33] : memref<24x128xf32, #tpu.memory_space<vmem>>, vector<1x32xf32>
    %c5 = arith.constant 5 : index
    %c0_34 = arith.constant 0 : index
    %95 = vector.load %arg4[%c5, %c0_34] : memref<24x128xf32, #tpu.memory_space<vmem>>, vector<1x32xf32>
    %cst_35 = arith.constant dense<0.000000e+00> : vector<8xf32>
    %96 = vector.multi_reduction <add>, %93, %cst_35 [1] : vector<8x32xf32> to vector<8xf32>
    %97 = vector.shape_cast %96 : vector<8xf32> to vector<8x1xf32>
    %cst_36 = arith.constant 3.200000e+01 : f32
    %98 = vector.broadcast %cst_36 : f32 to vector<8x1xf32>
    %99 = arith.divf %97, %98 : vector<8x1xf32>
    %100 = vector.broadcast %99 : vector<8x1xf32> to vector<8x32xf32>
    %101 = arith.subf %93, %100 : vector<8x32xf32>
    %102 = arith.mulf %101, %101 : vector<8x32xf32>
    %cst_37 = arith.constant dense<0.000000e+00> : vector<8xf32>
    %103 = vector.multi_reduction <add>, %102, %cst_37 [1] : vector<8x32xf32> to vector<8xf32>
    %104 = vector.shape_cast %103 : vector<8xf32> to vector<8x1xf32>
    %cst_38 = arith.constant 3.200000e+01 : f32
    %105 = vector.broadcast %cst_38 : f32 to vector<8x1xf32>
    %106 = arith.divf %104, %105 : vector<8x1xf32>
    %107 = vector.broadcast %99 : vector<8x1xf32> to vector<8x32xf32>
    %108 = arith.subf %93, %107 : vector<8x32xf32>
    %cst_39 = arith.constant 9.99999996E-13 : f32
    %109 = vector.broadcast %cst_39 : f32 to vector<8x1xf32>
    %110 = arith.addf %106, %109 : vector<8x1xf32>
    %111 = math.rsqrt %110 : vector<8x1xf32>
    %112 = vector.broadcast %111 : vector<8x1xf32> to vector<8x32xf32>
    %113 = arith.mulf %108, %112 : vector<8x32xf32>
    %114 = vector.broadcast %94 : vector<1x32xf32> to vector<8x32xf32>
    %115 = arith.mulf %113, %114 : vector<8x32xf32>
    %116 = vector.broadcast %95 : vector<1x32xf32> to vector<8x32xf32>
    %117 = arith.addf %115, %116 : vector<8x32xf32>
    %118 = arith.truncf %117 : vector<8x32xf32> to vector<8x32xbf16>
    %cst_40 = arith.constant dense<0.000000e+00> : vector<8x64xf32>
    %119 = tpu.matmul %118, %34, %cst_40 {dimension_numbers = #tpu.dot_dimension_numbers<[1], [0], [0], [1], [0, 0, 1, 1], [], []>} : vector<8x32xbf16>, vector<32x64xbf16>, vector<8x64xf32> -> vector<8x64xf32>
    %c6 = arith.constant 6 : index
    %c0_41 = arith.constant 0 : index
    %120 = vector.load %arg4[%c6, %c0_41] : memref<24x128xf32, #tpu.memory_space<vmem>>, vector<1x64xf32>
    %121 = vector.broadcast %120 : vector<1x64xf32> to vector<8x64xf32>
    %122 = arith.addf %119, %121 : vector<8x64xf32>
    %cst_42 = arith.constant 5.000000e-01 : f32
    %123 = vector.broadcast %cst_42 : f32 to vector<8x64xf32>
    %124 = arith.mulf %123, %122 : vector<8x64xf32>
    %cst_43 = arith.constant 0.707106769 : f32
    %125 = vector.broadcast %cst_43 : f32 to vector<8x64xf32>
    %126 = arith.mulf %122, %125 : vector<8x64xf32>
    %cst_44 = arith.constant 0.000000e+00 : f32
    %127 = vector.broadcast %cst_44 : f32 to vector<8x64xf32>
    %128 = arith.cmpf oge, %126, %127 : vector<8x64xf32>
    %cst_45 = arith.constant 1.000000e+00 : f32
    %cst_46 = arith.constant -1.000000e+00 : f32
    %129 = vector.broadcast %cst_45 : f32 to vector<8x64xf32>
    %130 = vector.broadcast %cst_46 : f32 to vector<8x64xf32>
    %131 = arith.select %128, %129, %130 : vector<8x64xi1>, vector<8x64xf32>
    %132 = math.absf %126 : vector<8x64xf32>
    %cst_47 = arith.constant 0.327591091 : f32
    %133 = vector.broadcast %cst_47 : f32 to vector<8x64xf32>
    %134 = arith.mulf %133, %132 : vector<8x64xf32>
    %cst_48 = arith.constant 1.000000e+00 : f32
    %135 = vector.broadcast %cst_48 : f32 to vector<8x64xf32>
    %136 = arith.addf %135, %134 : vector<8x64xf32>
    %cst_49 = arith.constant 1.000000e+00 : f32
    %137 = vector.broadcast %cst_49 : f32 to vector<8x64xf32>
    %138 = arith.divf %137, %136 : vector<8x64xf32>
    %cst_50 = arith.constant 1.06140542 : f32
    %139 = vector.broadcast %cst_50 : f32 to vector<8x64xf32>
    %140 = arith.mulf %139, %138 : vector<8x64xf32>
    %cst_51 = arith.constant -1.45315206 : f32
    %141 = vector.broadcast %cst_51 : f32 to vector<8x64xf32>
    %142 = arith.addf %140, %141 : vector<8x64xf32>
    %143 = arith.mulf %142, %138 : vector<8x64xf32>
    %cst_52 = arith.constant 1.42141378 : f32
    %144 = vector.broadcast %cst_52 : f32 to vector<8x64xf32>
    %145 = arith.addf %143, %144 : vector<8x64xf32>
    %146 = arith.mulf %145, %138 : vector<8x64xf32>
    %cst_53 = arith.constant -0.284496725 : f32
    %147 = vector.broadcast %cst_53 : f32 to vector<8x64xf32>
    %148 = arith.addf %146, %147 : vector<8x64xf32>
    %149 = arith.mulf %148, %138 : vector<8x64xf32>
    %cst_54 = arith.constant 0.254829586 : f32
    %150 = vector.broadcast %cst_54 : f32 to vector<8x64xf32>
    %151 = arith.addf %149, %150 : vector<8x64xf32>
    %152 = arith.mulf %151, %138 : vector<8x64xf32>
    %cst_55 = arith.constant 0.000000e+00 : f32
    %153 = vector.broadcast %cst_55 : f32 to vector<8x64xf32>
    %154 = arith.subf %153, %132 : vector<8x64xf32>
    %155 = arith.mulf %154, %132 : vector<8x64xf32>
    %156 = math.exp %155 : vector<8x64xf32>
    %157 = arith.mulf %152, %156 : vector<8x64xf32>
    %cst_56 = arith.constant 1.000000e+00 : f32
    %158 = vector.broadcast %cst_56 : f32 to vector<8x64xf32>
    %159 = arith.subf %158, %157 : vector<8x64xf32>
    %160 = arith.mulf %131, %159 : vector<8x64xf32>
    %cst_57 = arith.constant 1.000000e+00 : f32
    %161 = vector.broadcast %cst_57 : f32 to vector<8x64xf32>
    %162 = arith.addf %161, %160 : vector<8x64xf32>
    %163 = arith.mulf %124, %162 : vector<8x64xf32>
    %164 = arith.truncf %163 : vector<8x64xf32> to vector<8x64xbf16>
    %cst_58 = arith.constant dense<0.000000e+00> : vector<8x32xf32>
    %165 = tpu.matmul %164, %35, %cst_58 {dimension_numbers = #tpu.dot_dimension_numbers<[1], [0], [0], [1], [0, 0, 1, 1], [], []>} : vector<8x64xbf16>, vector<64x32xbf16>, vector<8x32xf32> -> vector<8x32xf32>
    %c7 = arith.constant 7 : index
    %c0_59 = arith.constant 0 : index
    %166 = vector.load %arg4[%c7, %c0_59] : memref<24x128xf32, #tpu.memory_space<vmem>>, vector<1x32xf32>
    %167 = vector.broadcast %166 : vector<1x32xf32> to vector<8x32xf32>
    %168 = arith.addf %165, %167 : vector<8x32xf32>
    %169 = arith.addf %117, %168 : vector<8x32xf32>
    %c8 = arith.constant 8 : index
    %c0_60 = arith.constant 0 : index
    %170 = vector.load %arg4[%c8, %c0_60] : memref<24x128xf32, #tpu.memory_space<vmem>>, vector<1x32xf32>
    %c9 = arith.constant 9 : index
    %c0_61 = arith.constant 0 : index
    %171 = vector.load %arg4[%c9, %c0_61] : memref<24x128xf32, #tpu.memory_space<vmem>>, vector<1x32xf32>
    %cst_62 = arith.constant dense<0.000000e+00> : vector<8xf32>
    %172 = vector.multi_reduction <add>, %169, %cst_62 [1] : vector<8x32xf32> to vector<8xf32>
    %173 = vector.shape_cast %172 : vector<8xf32> to vector<8x1xf32>
    %cst_63 = arith.constant 3.200000e+01 : f32
    %174 = vector.broadcast %cst_63 : f32 to vector<8x1xf32>
    %175 = arith.divf %173, %174 : vector<8x1xf32>
    %176 = vector.broadcast %175 : vector<8x1xf32> to vector<8x32xf32>
    %177 = arith.subf %169, %176 : vector<8x32xf32>
    %178 = arith.mulf %177, %177 : vector<8x32xf32>
    %cst_64 = arith.constant dense<0.000000e+00> : vector<8xf32>
    %179 = vector.multi_reduction <add>, %178, %cst_64 [1] : vector<8x32xf32> to vector<8xf32>
    %180 = vector.shape_cast %179 : vector<8xf32> to vector<8x1xf32>
    %cst_65 = arith.constant 3.200000e+01 : f32
    %181 = vector.broadcast %cst_65 : f32 to vector<8x1xf32>
    %182 = arith.divf %180, %181 : vector<8x1xf32>
    %183 = vector.broadcast %175 : vector<8x1xf32> to vector<8x32xf32>
    %184 = arith.subf %169, %183 : vector<8x32xf32>
    %cst_66 = arith.constant 9.99999996E-13 : f32
    %185 = vector.broadcast %cst_66 : f32 to vector<8x1xf32>
    %186 = arith.addf %182, %185 : vector<8x1xf32>
    %187 = math.rsqrt %186 : vector<8x1xf32>
    %188 = vector.broadcast %187 : vector<8x1xf32> to vector<8x32xf32>
    %189 = arith.mulf %184, %188 : vector<8x32xf32>
    %190 = vector.broadcast %170 : vector<1x32xf32> to vector<8x32xf32>
    %191 = arith.mulf %189, %190 : vector<8x32xf32>
    %192 = vector.broadcast %171 : vector<1x32xf32> to vector<8x32xf32>
    %193 = arith.addf %191, %192 : vector<8x32xf32>
    %c160 = arith.constant 160 : index
    %c0_67 = arith.constant 0 : index
    %194 = vector.load %arg3[%c160, %c0_67] : memref<480x128xbf16, #tpu.memory_space<vmem>>, vector<32x96xbf16>
    %c192 = arith.constant 192 : index
    %c0_68 = arith.constant 0 : index
    %195 = vector.load %arg3[%c192, %c0_68] : memref<480x128xbf16, #tpu.memory_space<vmem>>, vector<32x32xbf16>
    %c224 = arith.constant 224 : index
    %c0_69 = arith.constant 0 : index
    %196 = vector.load %arg3[%c224, %c0_69] : memref<480x128xbf16, #tpu.memory_space<vmem>>, vector<32x64xbf16>
    %c256 = arith.constant 256 : index
    %c0_70 = arith.constant 0 : index
    %197 = vector.load %arg3[%c256, %c0_70] : memref<480x128xbf16, #tpu.memory_space<vmem>>, vector<64x32xbf16>
    %198 = arith.truncf %193 : vector<8x32xf32> to vector<8x32xbf16>
    %cst_71 = arith.constant dense<0.000000e+00> : vector<8x96xf32>
    %199 = tpu.matmul %198, %194, %cst_71 {dimension_numbers = #tpu.dot_dimension_numbers<[1], [0], [0], [1], [0, 0, 1, 1], [], []>} : vector<8x32xbf16>, vector<32x96xbf16>, vector<8x96xf32> -> vector<8x96xf32>
    %c10 = arith.constant 10 : index
    %c0_72 = arith.constant 0 : index
    %200 = vector.load %arg4[%c10, %c0_72] : memref<24x128xf32, #tpu.memory_space<vmem>>, vector<1x96xf32>
    %201 = vector.broadcast %200 : vector<1x96xf32> to vector<8x96xf32>
    %202 = arith.addf %199, %201 : vector<8x96xf32>
    %203 = vector.extract_strided_slice %202 {offsets = [0, 0], sizes = [8, 16], strides = [1, 1]} : vector<8x96xf32> to vector<8x16xf32>
    %204 = arith.truncf %203 : vector<8x16xf32> to vector<8x16xbf16>
    %205 = vector.extract_strided_slice %202 {offsets = [0, 32], sizes = [8, 16], strides = [1, 1]} : vector<8x96xf32> to vector<8x16xf32>
    %206 = arith.truncf %205 : vector<8x16xf32> to vector<8x16xbf16>
    %207 = vector.extract_strided_slice %202 {offsets = [0, 64], sizes = [8, 16], strides = [1, 1]} : vector<8x96xf32> to vector<8x16xf32>
    %208 = arith.truncf %207 : vector<8x16xf32> to vector<8x16xbf16>
    %cst_73 = arith.constant dense<0.000000e+00> : vector<8x8xf32>
    %209 = tpu.matmul %204, %206, %cst_73 {dimension_numbers = #tpu.dot_dimension_numbers<[1], [1], [0], [0], [0, 0, 1, 0], [], []>} : vector<8x16xbf16>, vector<8x16xbf16>, vector<8x8xf32> -> vector<8x8xf32>
    %cst_74 = arith.constant 2.500000e-01 : f32
    %210 = vector.broadcast %cst_74 : f32 to vector<8x8xf32>
    %211 = arith.mulf %209, %210 : vector<8x8xf32>
    %212 = vector.broadcast %31 : vector<1x8xf32> to vector<8x8xf32>
    %213 = arith.addf %211, %212 : vector<8x8xf32>
    %cst_75 = arith.constant dense<0xFF800000> : vector<8xf32>
    %214 = vector.multi_reduction <maximumf>, %213, %cst_75 [1] : vector<8x8xf32> to vector<8xf32>
    %215 = vector.shape_cast %214 : vector<8xf32> to vector<8x1xf32>
    %216 = vector.broadcast %215 : vector<8x1xf32> to vector<8x8xf32>
    %217 = arith.subf %213, %216 : vector<8x8xf32>
    %218 = math.exp %217 : vector<8x8xf32>
    %cst_76 = arith.constant dense<0.000000e+00> : vector<8xf32>
    %219 = vector.multi_reduction <add>, %218, %cst_76 [1] : vector<8x8xf32> to vector<8xf32>
    %220 = vector.shape_cast %219 : vector<8xf32> to vector<8x1xf32>
    %221 = tpu.reciprocal %220 {approx = true} : vector<8x1xf32> -> vector<8x1xf32>
    %222 = vector.broadcast %221 : vector<8x1xf32> to vector<8x8xf32>
    %223 = arith.mulf %218, %222 : vector<8x8xf32>
    %224 = arith.truncf %223 : vector<8x8xf32> to vector<8x8xbf16>
    %cst_77 = arith.constant dense<0.000000e+00> : vector<8x16xf32>
    %225 = tpu.matmul %224, %208, %cst_77 {dimension_numbers = #tpu.dot_dimension_numbers<[1], [0], [0], [1], [0, 0, 1, 1], [], []>} : vector<8x8xbf16>, vector<8x16xbf16>, vector<8x16xf32> -> vector<8x16xf32>
    %226 = vector.extract_strided_slice %202 {offsets = [0, 16], sizes = [8, 16], strides = [1, 1]} : vector<8x96xf32> to vector<8x16xf32>
    %227 = arith.truncf %226 : vector<8x16xf32> to vector<8x16xbf16>
    %228 = vector.extract_strided_slice %202 {offsets = [0, 48], sizes = [8, 16], strides = [1, 1]} : vector<8x96xf32> to vector<8x16xf32>
    %229 = arith.truncf %228 : vector<8x16xf32> to vector<8x16xbf16>
    %230 = vector.extract_strided_slice %202 {offsets = [0, 80], sizes = [8, 16], strides = [1, 1]} : vector<8x96xf32> to vector<8x16xf32>
    %231 = arith.truncf %230 : vector<8x16xf32> to vector<8x16xbf16>
    %cst_78 = arith.constant dense<0.000000e+00> : vector<8x8xf32>
    %232 = tpu.matmul %227, %229, %cst_78 {dimension_numbers = #tpu.dot_dimension_numbers<[1], [1], [0], [0], [0, 0, 1, 0], [], []>} : vector<8x16xbf16>, vector<8x16xbf16>, vector<8x8xf32> -> vector<8x8xf32>
    %cst_79 = arith.constant 2.500000e-01 : f32
    %233 = vector.broadcast %cst_79 : f32 to vector<8x8xf32>
    %234 = arith.mulf %232, %233 : vector<8x8xf32>
    %235 = vector.broadcast %31 : vector<1x8xf32> to vector<8x8xf32>
    %236 = arith.addf %234, %235 : vector<8x8xf32>
    %cst_80 = arith.constant dense<0xFF800000> : vector<8xf32>
    %237 = vector.multi_reduction <maximumf>, %236, %cst_80 [1] : vector<8x8xf32> to vector<8xf32>
    %238 = vector.shape_cast %237 : vector<8xf32> to vector<8x1xf32>
    %239 = vector.broadcast %238 : vector<8x1xf32> to vector<8x8xf32>
    %240 = arith.subf %236, %239 : vector<8x8xf32>
    %241 = math.exp %240 : vector<8x8xf32>
    %cst_81 = arith.constant dense<0.000000e+00> : vector<8xf32>
    %242 = vector.multi_reduction <add>, %241, %cst_81 [1] : vector<8x8xf32> to vector<8xf32>
    %243 = vector.shape_cast %242 : vector<8xf32> to vector<8x1xf32>
    %244 = tpu.reciprocal %243 {approx = true} : vector<8x1xf32> -> vector<8x1xf32>
    %245 = vector.broadcast %244 : vector<8x1xf32> to vector<8x8xf32>
    %246 = arith.mulf %241, %245 : vector<8x8xf32>
    %247 = arith.truncf %246 : vector<8x8xf32> to vector<8x8xbf16>
    %cst_82 = arith.constant dense<0.000000e+00> : vector<8x16xf32>
    %248 = tpu.matmul %247, %231, %cst_82 {dimension_numbers = #tpu.dot_dimension_numbers<[1], [0], [0], [1], [0, 0, 1, 1], [], []>} : vector<8x8xbf16>, vector<8x16xbf16>, vector<8x16xf32> -> vector<8x16xf32>
    %249 = tpu.concatenate %225, %248 in 1 : vector<8x16xf32>, vector<8x16xf32> -> vector<8x32xf32>
    %250 = arith.truncf %249 : vector<8x32xf32> to vector<8x32xbf16>
    %cst_83 = arith.constant dense<0.000000e+00> : vector<8x32xf32>
    %251 = tpu.matmul %250, %195, %cst_83 {dimension_numbers = #tpu.dot_dimension_numbers<[1], [0], [0], [1], [0, 0, 1, 1], [], []>} : vector<8x32xbf16>, vector<32x32xbf16>, vector<8x32xf32> -> vector<8x32xf32>
    %c11 = arith.constant 11 : index
    %c0_84 = arith.constant 0 : index
    %252 = vector.load %arg4[%c11, %c0_84] : memref<24x128xf32, #tpu.memory_space<vmem>>, vector<1x32xf32>
    %253 = vector.broadcast %252 : vector<1x32xf32> to vector<8x32xf32>
    %254 = arith.addf %251, %253 : vector<8x32xf32>
    %255 = arith.addf %193, %254 : vector<8x32xf32>
    %c12 = arith.constant 12 : index
    %c0_85 = arith.constant 0 : index
    %256 = vector.load %arg4[%c12, %c0_85] : memref<24x128xf32, #tpu.memory_space<vmem>>, vector<1x32xf32>
    %c13 = arith.constant 13 : index
    %c0_86 = arith.constant 0 : index
    %257 = vector.load %arg4[%c13, %c0_86] : memref<24x128xf32, #tpu.memory_space<vmem>>, vector<1x32xf32>
    %cst_87 = arith.constant dense<0.000000e+00> : vector<8xf32>
    %258 = vector.multi_reduction <add>, %255, %cst_87 [1] : vector<8x32xf32> to vector<8xf32>
    %259 = vector.shape_cast %258 : vector<8xf32> to vector<8x1xf32>
    %cst_88 = arith.constant 3.200000e+01 : f32
    %260 = vector.broadcast %cst_88 : f32 to vector<8x1xf32>
    %261 = arith.divf %259, %260 : vector<8x1xf32>
    %262 = vector.broadcast %261 : vector<8x1xf32> to vector<8x32xf32>
    %263 = arith.subf %255, %262 : vector<8x32xf32>
    %264 = arith.mulf %263, %263 : vector<8x32xf32>
    %cst_89 = arith.constant dense<0.000000e+00> : vector<8xf32>
    %265 = vector.multi_reduction <add>, %264, %cst_89 [1] : vector<8x32xf32> to vector<8xf32>
    %266 = vector.shape_cast %265 : vector<8xf32> to vector<8x1xf32>
    %cst_90 = arith.constant 3.200000e+01 : f32
    %267 = vector.broadcast %cst_90 : f32 to vector<8x1xf32>
    %268 = arith.divf %266, %267 : vector<8x1xf32>
    %269 = vector.broadcast %261 : vector<8x1xf32> to vector<8x32xf32>
    %270 = arith.subf %255, %269 : vector<8x32xf32>
    %cst_91 = arith.constant 9.99999996E-13 : f32
    %271 = vector.broadcast %cst_91 : f32 to vector<8x1xf32>
    %272 = arith.addf %268, %271 : vector<8x1xf32>
    %273 = math.rsqrt %272 : vector<8x1xf32>
    %274 = vector.broadcast %273 : vector<8x1xf32> to vector<8x32xf32>
    %275 = arith.mulf %270, %274 : vector<8x32xf32>
    %276 = vector.broadcast %256 : vector<1x32xf32> to vector<8x32xf32>
    %277 = arith.mulf %275, %276 : vector<8x32xf32>
    %278 = vector.broadcast %257 : vector<1x32xf32> to vector<8x32xf32>
    %279 = arith.addf %277, %278 : vector<8x32xf32>
    %280 = arith.truncf %279 : vector<8x32xf32> to vector<8x32xbf16>
    %cst_92 = arith.constant dense<0.000000e+00> : vector<8x64xf32>
    %281 = tpu.matmul %280, %196, %cst_92 {dimension_numbers = #tpu.dot_dimension_numbers<[1], [0], [0], [1], [0, 0, 1, 1], [], []>} : vector<8x32xbf16>, vector<32x64xbf16>, vector<8x64xf32> -> vector<8x64xf32>
    %c14 = arith.constant 14 : index
    %c0_93 = arith.constant 0 : index
    %282 = vector.load %arg4[%c14, %c0_93] : memref<24x128xf32, #tpu.memory_space<vmem>>, vector<1x64xf32>
    %283 = vector.broadcast %282 : vector<1x64xf32> to vector<8x64xf32>
    %284 = arith.addf %281, %283 : vector<8x64xf32>
    %cst_94 = arith.constant 5.000000e-01 : f32
    %285 = vector.broadcast %cst_94 : f32 to vector<8x64xf32>
    %286 = arith.mulf %285, %284 : vector<8x64xf32>
    %cst_95 = arith.constant 0.707106769 : f32
    %287 = vector.broadcast %cst_95 : f32 to vector<8x64xf32>
    %288 = arith.mulf %284, %287 : vector<8x64xf32>
    %cst_96 = arith.constant 0.000000e+00 : f32
    %289 = vector.broadcast %cst_96 : f32 to vector<8x64xf32>
    %290 = arith.cmpf oge, %288, %289 : vector<8x64xf32>
    %cst_97 = arith.constant 1.000000e+00 : f32
    %cst_98 = arith.constant -1.000000e+00 : f32
    %291 = vector.broadcast %cst_97 : f32 to vector<8x64xf32>
    %292 = vector.broadcast %cst_98 : f32 to vector<8x64xf32>
    %293 = arith.select %290, %291, %292 : vector<8x64xi1>, vector<8x64xf32>
    %294 = math.absf %288 : vector<8x64xf32>
    %cst_99 = arith.constant 0.327591091 : f32
    %295 = vector.broadcast %cst_99 : f32 to vector<8x64xf32>
    %296 = arith.mulf %295, %294 : vector<8x64xf32>
    %cst_100 = arith.constant 1.000000e+00 : f32
    %297 = vector.broadcast %cst_100 : f32 to vector<8x64xf32>
    %298 = arith.addf %297, %296 : vector<8x64xf32>
    %cst_101 = arith.constant 1.000000e+00 : f32
    %299 = vector.broadcast %cst_101 : f32 to vector<8x64xf32>
    %300 = arith.divf %299, %298 : vector<8x64xf32>
    %cst_102 = arith.constant 1.06140542 : f32
    %301 = vector.broadcast %cst_102 : f32 to vector<8x64xf32>
    %302 = arith.mulf %301, %300 : vector<8x64xf32>
    %cst_103 = arith.constant -1.45315206 : f32
    %303 = vector.broadcast %cst_103 : f32 to vector<8x64xf32>
    %304 = arith.addf %302, %303 : vector<8x64xf32>
    %305 = arith.mulf %304, %300 : vector<8x64xf32>
    %cst_104 = arith.constant 1.42141378 : f32
    %306 = vector.broadcast %cst_104 : f32 to vector<8x64xf32>
    %307 = arith.addf %305, %306 : vector<8x64xf32>
    %308 = arith.mulf %307, %300 : vector<8x64xf32>
    %cst_105 = arith.constant -0.284496725 : f32
    %309 = vector.broadcast %cst_105 : f32 to vector<8x64xf32>
    %310 = arith.addf %308, %309 : vector<8x64xf32>
    %311 = arith.mulf %310, %300 : vector<8x64xf32>
    %cst_106 = arith.constant 0.254829586 : f32
    %312 = vector.broadcast %cst_106 : f32 to vector<8x64xf32>
    %313 = arith.addf %311, %312 : vector<8x64xf32>
    %314 = arith.mulf %313, %300 : vector<8x64xf32>
    %cst_107 = arith.constant 0.000000e+00 : f32
    %315 = vector.broadcast %cst_107 : f32 to vector<8x64xf32>
    %316 = arith.subf %315, %294 : vector<8x64xf32>
    %317 = arith.mulf %316, %294 : vector<8x64xf32>
    %318 = math.exp %317 : vector<8x64xf32>
    %319 = arith.mulf %314, %318 : vector<8x64xf32>
    %cst_108 = arith.constant 1.000000e+00 : f32
    %320 = vector.broadcast %cst_108 : f32 to vector<8x64xf32>
    %321 = arith.subf %320, %319 : vector<8x64xf32>
    %322 = arith.mulf %293, %321 : vector<8x64xf32>
    %cst_109 = arith.constant 1.000000e+00 : f32
    %323 = vector.broadcast %cst_109 : f32 to vector<8x64xf32>
    %324 = arith.addf %323, %322 : vector<8x64xf32>
    %325 = arith.mulf %286, %324 : vector<8x64xf32>
    %326 = arith.truncf %325 : vector<8x64xf32> to vector<8x64xbf16>
    %cst_110 = arith.constant dense<0.000000e+00> : vector<8x32xf32>
    %327 = tpu.matmul %326, %197, %cst_110 {dimension_numbers = #tpu.dot_dimension_numbers<[1], [0], [0], [1], [0, 0, 1, 1], [], []>} : vector<8x64xbf16>, vector<64x32xbf16>, vector<8x32xf32> -> vector<8x32xf32>
    %c15 = arith.constant 15 : index
    %c0_111 = arith.constant 0 : index
    %328 = vector.load %arg4[%c15, %c0_111] : memref<24x128xf32, #tpu.memory_space<vmem>>, vector<1x32xf32>
    %329 = vector.broadcast %328 : vector<1x32xf32> to vector<8x32xf32>
    %330 = arith.addf %327, %329 : vector<8x32xf32>
    %331 = arith.addf %279, %330 : vector<8x32xf32>
    %c16 = arith.constant 16 : index
    %c0_112 = arith.constant 0 : index
    %332 = vector.load %arg4[%c16, %c0_112] : memref<24x128xf32, #tpu.memory_space<vmem>>, vector<1x32xf32>
    %c17 = arith.constant 17 : index
    %c0_113 = arith.constant 0 : index
    %333 = vector.load %arg4[%c17, %c0_113] : memref<24x128xf32, #tpu.memory_space<vmem>>, vector<1x32xf32>
    %cst_114 = arith.constant dense<0.000000e+00> : vector<8xf32>
    %334 = vector.multi_reduction <add>, %331, %cst_114 [1] : vector<8x32xf32> to vector<8xf32>
    %335 = vector.shape_cast %334 : vector<8xf32> to vector<8x1xf32>
    %cst_115 = arith.constant 3.200000e+01 : f32
    %336 = vector.broadcast %cst_115 : f32 to vector<8x1xf32>
    %337 = arith.divf %335, %336 : vector<8x1xf32>
    %338 = vector.broadcast %337 : vector<8x1xf32> to vector<8x32xf32>
    %339 = arith.subf %331, %338 : vector<8x32xf32>
    %340 = arith.mulf %339, %339 : vector<8x32xf32>
    %cst_116 = arith.constant dense<0.000000e+00> : vector<8xf32>
    %341 = vector.multi_reduction <add>, %340, %cst_116 [1] : vector<8x32xf32> to vector<8xf32>
    %342 = vector.shape_cast %341 : vector<8xf32> to vector<8x1xf32>
    %cst_117 = arith.constant 3.200000e+01 : f32
    %343 = vector.broadcast %cst_117 : f32 to vector<8x1xf32>
    %344 = arith.divf %342, %343 : vector<8x1xf32>
    %345 = vector.broadcast %337 : vector<8x1xf32> to vector<8x32xf32>
    %346 = arith.subf %331, %345 : vector<8x32xf32>
    %cst_118 = arith.constant 9.99999996E-13 : f32
    %347 = vector.broadcast %cst_118 : f32 to vector<8x1xf32>
    %348 = arith.addf %344, %347 : vector<8x1xf32>
    %349 = math.rsqrt %348 : vector<8x1xf32>
    %350 = vector.broadcast %349 : vector<8x1xf32> to vector<8x32xf32>
    %351 = arith.mulf %346, %350 : vector<8x32xf32>
    %352 = vector.broadcast %332 : vector<1x32xf32> to vector<8x32xf32>
    %353 = arith.mulf %351, %352 : vector<8x32xf32>
    %354 = vector.broadcast %333 : vector<1x32xf32> to vector<8x32xf32>
    %355 = arith.addf %353, %354 : vector<8x32xf32>
    %356 = vector.extract_strided_slice %355 {offsets = [0, 0], sizes = [1, 32], strides = [1, 1]} : vector<8x32xf32> to vector<1x32xf32>
    %c320 = arith.constant 320 : index
    %c0_119 = arith.constant 0 : index
    %357 = vector.load %arg3[%c320, %c0_119] : memref<480x128xbf16, #tpu.memory_space<vmem>>, vector<32x128xbf16>
    %c352 = arith.constant 352 : index
    %c0_120 = arith.constant 0 : index
    %358 = vector.load %arg3[%c352, %c0_120] : memref<480x128xbf16, #tpu.memory_space<vmem>>, vector<128x128xbf16>
    %359 = arith.truncf %356 : vector<1x32xf32> to vector<1x32xbf16>
    %cst_121 = arith.constant dense<0.000000e+00> : vector<1x128xf32>
    %360 = tpu.matmul %359, %357, %cst_121 {dimension_numbers = #tpu.dot_dimension_numbers<[1], [0], [0], [1], [0, 0, 1, 1], [], []>} : vector<1x32xbf16>, vector<32x128xbf16>, vector<1x128xf32> -> vector<1x128xf32>
    %c18 = arith.constant 18 : index
    %c0_122 = arith.constant 0 : index
    %361 = vector.load %arg4[%c18, %c0_122] : memref<24x128xf32, #tpu.memory_space<vmem>>, vector<1x128xf32>
    %362 = arith.addf %360, %361 : vector<1x128xf32>
    %cst_123 = arith.constant 5.000000e-01 : f32
    %363 = vector.broadcast %cst_123 : f32 to vector<1x128xf32>
    %364 = arith.mulf %363, %362 : vector<1x128xf32>
    %cst_124 = arith.constant 0.707106769 : f32
    %365 = vector.broadcast %cst_124 : f32 to vector<1x128xf32>
    %366 = arith.mulf %362, %365 : vector<1x128xf32>
    %cst_125 = arith.constant 0.000000e+00 : f32
    %367 = vector.broadcast %cst_125 : f32 to vector<1x128xf32>
    %368 = arith.cmpf oge, %366, %367 : vector<1x128xf32>
    %cst_126 = arith.constant 1.000000e+00 : f32
    %cst_127 = arith.constant -1.000000e+00 : f32
    %369 = vector.broadcast %cst_126 : f32 to vector<1x128xf32>
    %370 = vector.broadcast %cst_127 : f32 to vector<1x128xf32>
    %371 = arith.select %368, %369, %370 : vector<1x128xi1>, vector<1x128xf32>
    %372 = math.absf %366 : vector<1x128xf32>
    %cst_128 = arith.constant 0.327591091 : f32
    %373 = vector.broadcast %cst_128 : f32 to vector<1x128xf32>
    %374 = arith.mulf %373, %372 : vector<1x128xf32>
    %cst_129 = arith.constant 1.000000e+00 : f32
    %375 = vector.broadcast %cst_129 : f32 to vector<1x128xf32>
    %376 = arith.addf %375, %374 : vector<1x128xf32>
    %cst_130 = arith.constant 1.000000e+00 : f32
    %377 = vector.broadcast %cst_130 : f32 to vector<1x128xf32>
    %378 = arith.divf %377, %376 : vector<1x128xf32>
    %cst_131 = arith.constant 1.06140542 : f32
    %379 = vector.broadcast %cst_131 : f32 to vector<1x128xf32>
    %380 = arith.mulf %379, %378 : vector<1x128xf32>
    %cst_132 = arith.constant -1.45315206 : f32
    %381 = vector.broadcast %cst_132 : f32 to vector<1x128xf32>
    %382 = arith.addf %380, %381 : vector<1x128xf32>
    %383 = arith.mulf %382, %378 : vector<1x128xf32>
    %cst_133 = arith.constant 1.42141378 : f32
    %384 = vector.broadcast %cst_133 : f32 to vector<1x128xf32>
    %385 = arith.addf %383, %384 : vector<1x128xf32>
    %386 = arith.mulf %385, %378 : vector<1x128xf32>
    %cst_134 = arith.constant -0.284496725 : f32
    %387 = vector.broadcast %cst_134 : f32 to vector<1x128xf32>
    %388 = arith.addf %386, %387 : vector<1x128xf32>
    %389 = arith.mulf %388, %378 : vector<1x128xf32>
    %cst_135 = arith.constant 0.254829586 : f32
    %390 = vector.broadcast %cst_135 : f32 to vector<1x128xf32>
    %391 = arith.addf %389, %390 : vector<1x128xf32>
    %392 = arith.mulf %391, %378 : vector<1x128xf32>
    %cst_136 = arith.constant 0.000000e+00 : f32
    %393 = vector.broadcast %cst_136 : f32 to vector<1x128xf32>
    %394 = arith.subf %393, %372 : vector<1x128xf32>
    %395 = arith.mulf %394, %372 : vector<1x128xf32>
    %396 = math.exp %395 : vector<1x128xf32>
    %397 = arith.mulf %392, %396 : vector<1x128xf32>
    %cst_137 = arith.constant 1.000000e+00 : f32
    %398 = vector.broadcast %cst_137 : f32 to vector<1x128xf32>
    %399 = arith.subf %398, %397 : vector<1x128xf32>
    %400 = arith.mulf %371, %399 : vector<1x128xf32>
    %cst_138 = arith.constant 1.000000e+00 : f32
    %401 = vector.broadcast %cst_138 : f32 to vector<1x128xf32>
    %402 = arith.addf %401, %400 : vector<1x128xf32>
    %403 = arith.mulf %364, %402 : vector<1x128xf32>
    %404 = arith.truncf %403 : vector<1x128xf32> to vector<1x128xbf16>
    %cst_139 = arith.constant dense<0.000000e+00> : vector<1x128xf32>
    %405 = tpu.matmul %404, %358, %cst_139 {dimension_numbers = #tpu.dot_dimension_numbers<[1], [0], [0], [1], [0, 0, 1, 1], [], []>} : vector<1x128xbf16>, vector<128x128xbf16>, vector<1x128xf32> -> vector<1x128xf32>
    %c19 = arith.constant 19 : index
    %c0_140 = arith.constant 0 : index
    %406 = vector.load %arg4[%c19, %c0_140] : memref<24x128xf32, #tpu.memory_space<vmem>>, vector<1x128xf32>
    %407 = arith.addf %405, %406 : vector<1x128xf32>
    %c0_141 = arith.constant 0 : index
    %c0_142 = arith.constant 0 : index
    %c0_143 = arith.constant 0 : index
    %408 = vector.load %arg5[%c0_141, %c0_142, %c0_143] : memref<1x1x128xf32, #tpu.memory_space<vmem>>, vector<1x1x128xf32>
    %409 = vector.shape_cast %408 : vector<1x1x128xf32> to vector<1x128xf32>
    %410 = vector.shape_cast %407 : vector<1x128xf32> to vector<1x1x128xf32>
    tpu.vector_store %arg5[%c0_141, %c0_142, %c0_143], %410 {strides = array<i32>} : memref<1x1x128xf32, #tpu.memory_space<vmem>>, vector<1x1x128xf32>,
    return
  }
  func.func @transform_0(%arg0: i32) -> (i32, i32, i32) {
    %c0_i32 = arith.constant 0 : i32
    %c0_i32_0 = arith.constant 0 : i32
    %c0_i32_1 = arith.constant 0 : i32
    return %arg0, %c0_i32, %c0_i32_0 : i32, i32, i32
  }
  func.func @transform_1(%arg0: i32) -> (i32, i32, i32) {
    %c0_i32 = arith.constant 0 : i32
    %c0_i32_0 = arith.constant 0 : i32
    %c0_i32_1 = arith.constant 0 : i32
    return %arg0, %c0_i32, %c0_i32_0 : i32, i32, i32
  }
  func.func @transform_2(%arg0: i32) -> (i32, i32) {
    %c0_i32 = arith.constant 0 : i32
    %c0_i32_0 = arith.constant 0 : i32
    %c0_i32_1 = arith.constant 0 : i32
    return %c0_i32, %c0_i32_0 : i32, i32
  }
  func.func @transform_3(%arg0: i32) -> (i32, i32) {
    %c0_i32 = arith.constant 0 : i32
    %c0_i32_0 = arith.constant 0 : i32
    %c0_i32_1 = arith.constant 0 : i32
    return %c0_i32, %c0_i32_0 : i32, i32
  }
  func.func @transform_4(%arg0: i32) -> (i32, i32, i32) {
    %c0_i32 = arith.constant 0 : i32
    %c0_i32_0 = arith.constant 0 : i32
    %c0_i32_1 = arith.constant 0 : i32
    return %arg0, %c0_i32, %c0_i32_0 : i32, i32, i32
  }
}

</mosaic_0001>

<bundles_post_ra>
// kernel: bert_regressor_forward.1
= control target key start
LH: loop header
LB: loop body
LE: loop exit
PB: predicated region body
PF: predicated region fallthrough
CT: control target
= control target key end

     0   :  { %s2070_s15 = smov 0   ;;  %s2403_s0 = inlined_call_operand.vmem [shape: f32[2,8,32], index: 0, kind: input, shape index: {}]   ;;  %s2404_s1 = inlined_call_operand.vmem [shape: f32[2,1,8], index: 1, kind: input, shape index: {}]   ;;  %s2405_s2 = inlined_call_operand.vmem [shape: bf16[480,128], index: 2, kind: input, shape index: {}]   ;;  %s2406_s3 = inlined_call_operand.vmem [shape: f32[24,128], index: 3, kind: input, shape index: {}]   ;;  %s2407_s4 = inlined_call_operand.vmem [shape: f32[2,1,128], index: 4, kind: output, shape index: {}]  }
   0x1 LB: > { %s1666_s16 = sadd.s32 4294967295, %s2034_s15   ;;  %p1670_p0 = scmp.ge.s32.totalorder %s2034_s15, 1  ;;  %s2034_s15 = sphi %s2070_s15, %s14_s15  }
   0x2   : > { %p169_p1 = scmp.lt.s32.totalorder %s2034_s15, 3 }
   0x4   : > { %p170_p2 = pnand %p1670_p0, %p169_p1 }
   0x5   : > { %p195_p3 = scmp.lt.s32.totalorder (!%p170_p2), %s1666_s16, 1  ;;  %vm209_vm0 = vcmask (!%p170_p2), 261120   ;;  %v1960_v7 = vld [vmem:[%s2405_s2] sm:$0xff] (!%p170_p2)   ;;  %v2036_v8 = vmov (!%p170_p2), 0.0   ;;  %v1961_v9 = vld [vmem:[%s2405_s2 + $0x8] sm:$0xff] (!%p170_p2)   ;;  %vm2037_vm1 = vmmov (!%p170_p2), 0   ;;  %v371_v32 = vlaneseq (!%p170_p2) }
   0x6   : > { %173 = sbr.rel (%p170_p2) target bundleno = 5878 (0x16f6), region = 36  ;;  %1795 = vmatprep.subr.bf16.mxu0 (!%p170_p2), %v2036_v8  ;;  %1815 = vmatprep.subr.bf16.mxu1 (!%p170_p2), %v2036_v8  ;;  %v1672_v14 = vld [vmem:[%s2406_s3] ss:$0 sm:$0xff] (!%p170_p2)  ;;  %v1673_v16 = vld [vmem:[%s2406_s3 + $0x1] ss:$0 sm:$0xff] (!%p170_p2)  ;;  %s2038_s5 = smov (!%p170_p2), 112  }
   0x7   : > { %1796 = vmatpush3.bf16.msra.mxu0 (!%p170_p2), %v1960_v7  ;;  %1799 = vmatprep.mubr.msk.bf16.mxu0 (!%p170_p2), %vm2037_vm1, %v2036_v8  ;;  %v1674_v20 = vld [vmem:[%s2406_s3 + $0x2] ss:$0 sm:$0xff] (!%p170_p2)  ;;  %s2039_s6 = smov (!%p170_p2), 96   ;;  %s2040_s7 = smov (!%p170_p2), 80   ;;  %vm322_vm2 = vcmask (!%p170_p2), 130048   ;;  %v372_v35 = vshrl.u32 (!%p170_p2), %v371_v32, 7 }
   0x8   : > { %1797 = vmatprep.subr.bf16.mxu0 (!%p170_p2), %v2036_v8  ;;  %1817 = vmatprep.mubr.msk.bf16.mxu1 (!%p170_p2), %vm2037_vm1, %v2036_v8  ;;  %vm377_vm3 = vcmask (!%p170_p2), 64512   ;;  %s2041_s11 = smov (!%p170_p2), 48   ;;  %s2042_s12 = smov (!%p170_p2), 64   ;;  %vm395_vm4 = vcmask (!%p170_p2), 1043456   ;;  %vm761_vm6 = vcmask (!%p170_p2), 523264  }
   0x9   : > { %v373_v37 = vsub.s32 (!%p170_p2), 0, %v372_v35  ;;  %s2043_s19 = smov (!%p170_p2), 16  }
   0xb   : > { %1798 = vmatpush3.bf16.msra.mxu0 (!%p170_p2), %v1961_v9 }
   0xc   : > { %1803 = vmatprep.subr.bf16.mxu0 (!%p170_p2), %v2036_v8 }
   0xd   : > { %s2409_s16 = smov (!%p195_p3, %s1666_s16), 1 }
   0xe   : > { %s1671_s17 = sshll.u32 %s2409_s16, 3  ;;  %s201_s10 = scalar_lea.vmem %s2404_s1, %s2409_s16 }
   0xf   : > { %s198_s20 = scalar_lea.vmem %s2403_s0, %s1671_s17  ;;  %v234_v33 = vld [vmem:[%s201_s10] sm:$0x1]  ;;  %s204_s17 = scalar_lea.vmem %s2407_s4, %s2409_s16 }
  0x10   : > { %v206_v0 = vld [vmem:[%s198_s20] sm:$0xff]  ;;  %v235_v34 = vsub.f32 1.0, %v234_v33 }
  0x11   : > { %v210_v1 = vsel %vm209_vm0, %v206_v0, 0.0 }
  0x12   : > { %211 = vadd.xlane.f32.xlu0 %v210_v1  ;;  %v236_v36 = vmul.f32 -1e+09, %v235_v34 }
  0x14   : > { %v2139_v38 = vrot.slane %v236_v36, %v373_v37 }
  0x9f   : > { %v212_v2 = vpop.xlane.xlu0 %211 }
  0xa0   : > { %v214_v3 = vmul.f32 0.03125, %v212_v2 }
  0xa2   : > { %v215_v4 = vsub.f32 %v206_v0, %v214_v3 }
  0xa4   : > { %v216_v5 = vmul.f32 %v215_v4, %v215_v4 }
  0xa6   : > { %v217_v6 = vsel %vm209_vm0, %v216_v5, 0.0 }
  0xa7   : > { %218 = vadd.xlane.f32.xlu0 %v217_v6 }
 0x134   : > { %v219_v10 = vpop.xlane.xlu0 %218 }
 0x135   : > { %v220_v11 = vmul.f32 0.03125, %v219_v10 }
 0x137   : > { %v221_v12 = vadd.f32 1e-12, %v220_v11 }
 0x139   : > { %1990 = vrsqrt.f32 %v221_v12  ;;  %v1962_v12 = vld [vmem:[%s2405_s2 + $0x10] sm:$0xff]  }
 0x143   : > { %v1991_v13 = vpop.eup %1990 }
 0x144   : > { %v223_v15 = vmul.f32 %v1991_v13, %v215_v4  ;;  %v1963_v13 = vld [vmem:[%s2405_s2 + $0x18] sm:$0xff]  }
 0x146   : > { %v228_v17 = vmul.f32 %v1672_v14, %v223_v15 }
 0x148   : > { %v2106_v18 = vadd.f32 %v1673_v16, %v228_v17 }
 0x14a   : > { %v257_v19 = vpack.c.bf16 %v2106_v18, %v2106_v18 }
 0x14c   : > { %1800 = vmatmul.mubr.msk.bf16.vlgmr.msra.gmra.mrb[0].mxu0 %vm209_vm0, %v257_v19 }
 0x14d   : > { %1805 = vmatprep.mubr.msk.bf16.mxu0 %vm2037_vm1, %v2036_v8 }
 0x21f   : > { %v312_v21 = vpop.f32.mrb[0].mxu0 }
 0x220   : > { %v313_v22 = vadd.f32 %v1674_v20, %v312_v21  ;;  %v1801_v23 = vpop.f32.mrb[1].mxu0 }
 0x221   : > { %v315_v24 = vpop.f32.mrb[2].mxu0 }
 0x222   : > { %v2116_v25 = vpack.c.bf16 %v313_v22, %v313_v22  ;;  %v1802_v26 = vpop.f32.mrb[3].mxu0 }
 0x223   : > { %v1682_v26 = vld [vmem:[%s2406_s3 + $0x3] ss:$0 sm:$0xff] }
 0x224   : > { %439 = vrot.lane.b32.xlu0 %v2116_v25, %s2038_s5  ;;  %320 = vrot.lane.b32.xlu1 %v2116_v25, %s2039_s6 }
 0x228   : > { %441 = vrot.lane.b32.xlu1 %v2116_v25, %s2040_s7 }
 0x296   : > { %v321_v27 = vpop.permute.xlu1 %320  ;;  %v440_v31 = vpop.permute.xlu0 %439 }
 0x297   : > { %v327_v28 = vsel %vm322_vm2, %v321_v27, 0 }
 0x298   : > { %1804 = vmatpush3.bf16.xpose.msra.mxu0 %v327_v28 }
 0x299   : > { %1809 = vmatprep.subr.bf16.mxu0 %v2036_v8 }
 0x29a   : > { %v442_v29 = vpop.permute.xlu1 %441 }
 0x29b   : > { %v447_v30 = vsel %vm322_vm2, %v442_v29, 0 }
 0x29c   : > { %1816 = vmatpush3.bf16.xpose.msra.mxu1 %v447_v30 }
 0x29d   : > { %1827 = vmatprep.subr.bf16.mxu1 %v2036_v8 }
 0x29f   : > { %1806 = vmatmul.mubr.msk.bf16.vlgmr.msra.gmra.mrb[4].mxu0 %vm322_vm2, %v2116_v25 }
 0x2a0   : > { %1811 = vmatprep.mubr.msk.bf16.mxu0 %vm2037_vm1, %v2036_v8 }
 0x2a3   : > { %1818 = vmatmul.mubr.msk.bf16.vlgmr.msra.gmra.mrb[0].mxu1 %vm322_vm2, %v440_v31 }
 0x2a4   : > { %1831 = vmatprep.mubr.msk.bf16.mxu1 %vm2037_vm1, %v2036_v8  ;;  %1828 = vmatpush3.bf16.msra.mxu1 %v1962_v12 }
 0x2a5   : > { %1829 = vmatprep.subr.bf16.mxu1 %v2036_v8 }
 0x2a8   : > { %1830 = vmatpush3.bf16.msra.mxu1 %v1963_v13 }
 0x2a9   : > { %1843 = vmatprep.subr.bf16.mxu1 %v2036_v8 }
 0x372   : > { %v363_v39 = vpop.f32.mrb[4].mxu0 }
 0x373   : > { %v369_v40 = vmul.f32 0.25, %v363_v39  ;;  %v1807_v41 = vpop.f32.mrb[5].mxu0 }
 0x374   : > { %v366_v42 = vpop.f32.mrb[6].mxu0  ;;  %v1965_v41 = vld [vmem:[%s2405_s2 + $0x28] sm:$0xff]  }
 0x375   : > { %v1808_v43 = vpop.f32.mrb[7].mxu0  ;;  %v376_v44 = vadd.f32 %v2139_v38, %v369_v40  ;;  %v1964_v40 = vld [vmem:[%s2405_s2 + $0x20] sm:$0xff]  }
 0x376   : > { %v483_v45 = vpop.f32.mrb[0].mxu1 }
 0x377   : > { %v489_v46 = vmul.f32 0.25, %v483_v45  ;;  %v1819_v47 = vpop.f32.mrb[1].mxu1  ;;  %v378_v48 = vsel %vm377_vm3, %v376_v44, -inf  ;;  %v1686_v45 = vld [vmem:[%s2406_s3 + $0x4] ss:$0 sm:$0xff] }
 0x378   : > { %v486_v49 = vpop.f32.mrb[2].mxu1  ;;  %379 = vmax.xlane.f32.xlu1 %v378_v48  ;;  %v1687_v47 = vld [vmem:[%s2406_s3 + $0x5] ss:$0 sm:$0xff] }
 0x379   : > { %v1820_v50 = vpop.f32.mrb[3].mxu1  ;;  %v490_v51 = vadd.f32 %v489_v46, %v2139_v38 }
 0x37b   : > { %v491_v52 = vsel %vm377_vm3, %v490_v51, -inf }
 0x37c   : > { %492 = vmax.xlane.f32.xlu0 %v491_v52  ;;  %v1967_v52 = vld [vmem:[%s2405_s2 + $0x38] sm:$0xff]  }
 0x392   : > { %503 = vrot.lane.b32.xlu0 %v2116_v25, %s2041_s11 }
 0x405   : > { %v380_v53 = vpop.xlane.xlu1 %379 }
 0x406   : > { %v381_v54 = vsub.f32 %v376_v44, %v380_v53  ;;  %v1968_v53 = vld [vmem:[%s2405_s2 + $0x40] sm:$0xff]  }
 0x408   : > { %v382_v55 = vmul.f32 1.442695, %v381_v54  ;;  %v1969_v54 = vld [vmem:[%s2405_s2 + $0x48] sm:$0xff]  }
 0x409   : > { %v493_v56 = vpop.xlane.xlu0 %492 }
 0x40a   : > { %1992 = vpow2.f32 %v382_v55  ;;  %v494_v57 = vsub.f32 %v490_v51, %v493_v56  ;;  %v1966_v51 = vld [vmem:[%s2405_s2 + $0x30] sm:$0xff]   ;;  %v1688_v55 = vld [vmem:[%s2406_s3 + $0x6] ss:$0 sm:$0xff] }
 0x40c   : > { %v495_v58 = vmul.f32 1.442695, %v494_v57 }
 0x40d   : > { %v504_v5 = vpop.permute.xlu0 %503 }
 0x40e   : > { %1994 = vpow2.f32 %v495_v58  ;;  %v509_v9 = vsel %vm395_vm4, %v504_v5, 0 }
 0x414   : > { %v1993_v59 = vpop.eup %1992 }
 0x415   : > { %v384_v60 = vsel %vm377_vm3, %v1993_v59, 0.0 }
 0x416   : > { %385 = vadd.xlane.f32.xlu1 %v384_v60 }
 0x418   : > { %v1995_v61 = vpop.eup %1994 }
 0x419   : > { %v497_v62 = vsel %vm377_vm3, %v1995_v61, 0.0 }
 0x41a   : > { %498 = vadd.xlane.f32.xlu1 %v497_v62 }
 0x42b   : > { %390 = vrot.lane.b32.xlu1 %v2116_v25, %s2042_s12 }
 0x4a3   : > { %v386_v63 = vpop.xlane.xlu1 %385 }
 0x4a4   : > { %1996 = vrcp.f32 %v386_v63 }
 0x4a7   : > { %v499_v0 = vpop.xlane.xlu1 %498 }
 0x4a8   : > { %1998 = vrcp.f32 %v499_v0 }
 0x4ab   : > { %v391_v1 = vpop.permute.xlu1 %390 }
 0x4ac   : > { %v397_v2 = vsel %vm395_vm4, %v391_v1, 0 }
 0x4ad   : > { %1810 = vmatpush3.bf16.msra.mxu0 %v397_v2 }
 0x4ae   : > { %v1997_v3 = vpop.eup %1996  ;;  %1821 = vmatprep.subr.bf16.mxu0 %v2036_v8 }
 0x4af   : > { %v388_v4 = vmul.f32 %v1997_v3, %v1993_v59 }
 0x4b1   : > { %v389_v6 = vpack.c.bf16 %v388_v4, %v388_v4 }
 0x4b2   : > { %v1999_v7 = vpop.eup %1998 }
 0x4b3   : > { %1812 = vmatmul.mubr.msk.bf16.vlgmr.msra.gmra.mrb[8].mxu0 %vm377_vm3, %v389_v6  ;;  %v501_v10 = vmul.f32 %v1999_v7, %v1995_v61 }
 0x4b4   : > { %1822 = vmatpush3.bf16.msra.mxu0 %v509_v9  ;;  %1823 = vmatprep.mubr.msk.bf16.mxu0 %vm2037_vm1, %v2036_v8 }
 0x4b5   : > { %1835 = vmatprep.subr.bf16.mxu0 %v2036_v8  ;;  %v502_v11 = vpack.c.bf16 %v501_v10, %v501_v10 }
 0x4bb   : > { %1824 = vmatmul.mubr.msk.bf16.vlgmr.msra.gmra.mrb[12].mxu0 %vm377_vm3, %v502_v11 }
 0x4bc   : > { %1839 = vmatprep.mubr.msk.bf16.mxu0 %vm2037_vm1, %v2036_v8  ;;  %1836 = vmatpush3.bf16.msra.mxu0 %v1964_v40  ;;  %v1970_v40 = vld [vmem:[%s2405_s2 + $0x50] sm:$0xff]  }
 0x4bd   : > { %1837 = vmatprep.subr.bf16.mxu0 %v2036_v8 }
 0x4c0   : > { %1838 = vmatpush3.bf16.msra.mxu0 %v1965_v41  ;;  %v1971_v41 = vld [vmem:[%s2405_s2 + $0x58] sm:$0xff]  }
 0x4c1   : > { %1855 = vmatprep.subr.bf16.mxu0 %v2036_v8 }
 0x586   : > { %v433_v14 = vpop.f32.mrb[8].mxu0 }
 0x587   : > { %v1813_v15 = vpop.f32.mrb[9].mxu0 }
 0x588   : > { %v436_v16 = vpop.f32.mrb[10].mxu0 }
 0x589   : > { %v1814_v17 = vpop.f32.mrb[11].mxu0 }
 0x58e   : > { %v545_v19 = vpop.f32.mrb[12].mxu0 }
 0x58f   : > { %552 = vrot.lane.b32.xlu1 %v545_v19, %s2043_s19  ;;  %v1825_v20 = vpop.f32.mrb[13].mxu0  ;;  %v2044_v19 = vmov -1.0  }
 0x590   : > { %v548_v21 = vpop.f32.mrb[14].mxu0 }
 0x591   : > { %v1826_v22 = vpop.f32.mrb[15].mxu0 }
 0x601   : > { %v553_v23 = vpop.permute.xlu1 %552 }
 0x602   : > { %v555_v24 = vsel %vm322_vm2, %v433_v14, %v553_v23 }
 0x603   : > { %v556_v25 = vpack.c.bf16 %v555_v24, %v555_v24 }
 0x605   : > { %1832 = vmatmul.mubr.msk.bf16.vlgmr.msra.gmra.mrb[4].mxu1 %vm209_vm0, %v556_v25 }
 0x606   : > { %1851 = vmatprep.mubr.msk.bf16.mxu1 %vm2037_vm1, %v2036_v8  ;;  %1844 = vmatpush3.bf16.msra.mxu1 %v1966_v51  ;;  %v1700_v51 = vld [vmem:[%s2406_s3 + $0xa] ss:$0 sm:$0xff] }
 0x607   : > { %1845 = vmatprep.subr.bf16.mxu1 %v2036_v8 }
 0x60a   : > { %1846 = vmatpush3.bf16.msra.mxu1 %v1967_v52 }
 0x60b   : > { %1847 = vmatprep.subr.bf16.mxu1 %v2036_v8 }
 0x60e   : > { %1848 = vmatpush3.bf16.msra.mxu1 %v1968_v53 }
 0x60f   : > { %1849 = vmatprep.subr.bf16.mxu1 %v2036_v8 }
 0x612   : > { %1850 = vmatpush3.bf16.msra.mxu1 %v1969_v54 }
 0x613   : > { %1869 = vmatprep.subr.bf16.mxu1 %v2036_v8 }
 0x6d8   : > { %v611_v27 = vpop.f32.mrb[4].mxu1 }
 0x6d9   : > { %v612_v28 = vadd.f32 %v1682_v26, %v611_v27  ;;  %v1833_v29 = vpop.f32.mrb[5].mxu1  ;;  %v1692_v26 = vld [vmem:[%s2406_s3 + $0x7] ss:$0 sm:$0xff] }
 0x6da   : > { %v614_v30 = vpop.f32.mrb[6].mxu1 }
 0x6db   : > { %v1834_v31 = vpop.f32.mrb[7].mxu1  ;;  %v617_v32 = vadd.f32 %v612_v28, %v2106_v18 }
 0x6dd   : > { %v620_v33 = vsel %vm209_vm0, %v617_v32, 0.0 }
 0x6de   : > { %621 = vadd.xlane.f32.xlu1 %v620_v33 }
 0x76b   : > { %v622_v34 = vpop.xlane.xlu1 %621 }
 0x76c   : > { %v623_v35 = vmul.f32 0.03125, %v622_v34 }
 0x76e   : > { %v624_v36 = vsub.f32 %v617_v32, %v623_v35 }
 0x770   : > { %v625_v37 = vmul.f32 %v624_v36, %v624_v36 }
 0x772   : > { %v626_v39 = vsel %vm209_vm0, %v625_v37, 0.0 }
 0x773   : > { %627 = vadd.xlane.f32.xlu0 %v626_v39 }
 0x800   : > { %v628_v18 = vpop.xlane.xlu0 %627 }
 0x801   : > { %v629_v42 = vmul.f32 0.03125, %v628_v18 }
 0x803   : > { %v630_v43 = vadd.f32 1e-12, %v629_v42 }
 0x805   : > { %2000 = vrsqrt.f32 %v630_v43 }
 0x80f   : > { %v2001_v44 = vpop.eup %2000 }
 0x810   : > { %v632_v46 = vmul.f32 %v2001_v44, %v624_v36 }
 0x812   : > { %v637_v48 = vmul.f32 %v1686_v45, %v632_v46  ;;  %v1698_v45 = vld [vmem:[%s2406_s3 + $0x8] ss:$0 sm:$0xff] }
 0x814   : > { %v642_v49 = vadd.f32 %v1687_v47, %v637_v48  ;;  %v1699_v47 = vld [vmem:[%s2406_s3 + $0x9] ss:$0 sm:$0xff] }
 0x816   : > { %v643_v50 = vpack.c.bf16 %v642_v49, %v642_v49 }
 0x818   : > { %1840 = vmatmul.mubr.msk.bf16.vlgmr.msra.gmra.mrb[16].mxu0 %vm209_vm0, %v643_v50 }
 0x819   : > { %1859 = vmatprep.mubr.msk.bf16.mxu0 %vm2037_vm1, %v2036_v8  ;;  %1856 = vmatpush3.bf16.msra.mxu0 %v1970_v40 }
 0x81a   : > { %1857 = vmatprep.subr.bf16.mxu0 %v2036_v8 }
 0x81d   : > { %1858 = vmatpush3.bf16.msra.mxu0 %v1971_v41 }
 0x81e   : > { %1863 = vmatprep.subr.bf16.mxu0 %v2036_v8 }
 0x8eb   : > { %v698_v56 = vpop.f32.mrb[16].mxu0 }
 0x8ec   : > { %v699_v57 = vadd.f32 %v1688_v55, %v698_v56  ;;  %v1841_v58 = vpop.f32.mrb[17].mxu0 }
 0x8ed   : > { %v701_v59 = vpop.f32.mrb[18].mxu0 }
 0x8ee   : > { %v705_v60 = vmul.f32 0.70710677, %v699_v57  ;;  %v1842_v61 = vpop.f32.mrb[19].mxu0  ;;  %v704_v22 = vmul.f32 0.5, %v699_v57 }
 0x8f0   : > { %v708_v62 = vand.u32 2147483647, %v705_v60  ;;  %vm706_vm5 = vcmp.ge.f32.partialorder %v705_v60, 0.0 }
 0x8f1   : > { %v707_v20 = vsel %vm706_vm5, 1.0, %v2044_v19 }
 0x8f2   : > { %v709_v63 = vmul.f32 0.3275911, %v708_v62  ;;  %v722_v1 = vsub.f32 0.0, %v708_v62 }
 0x8f4   : > { %v710_v0 = vadd.f32 1.0, %v709_v63  ;;  %v723_v3 = vmul.f32 %v722_v1, %v708_v62 }
 0x8f6   : > { %2002 = vrcp.f32 %v710_v0  ;;  %v724_v6 = vmul.f32 1.442695, %v723_v3 }
 0x8f8   : > { %2004 = vpow2.f32 %v724_v6 }
 0x900   : > { %v2003_v2 = vpop.eup %2002 }
 0x901   : > { %v713_v4 = vmul.f32 1.0614054, %v2003_v2 }
 0x902   : > { %v2005_v15 = vpop.eup %2004 }
 0x903   : > { %v714_v5 = vadd.f32 -1.4531521, %v713_v4 }
 0x905   : > { %v715_v7 = vmul.f32 %v2003_v2, %v714_v5 }
 0x907   : > { %v716_v9 = vadd.f32 1.4214138, %v715_v7 }
 0x909   : > { %v717_v10 = vmul.f32 %v2003_v2, %v716_v9 }
 0x90b   : > { %v718_v11 = vadd.f32 -0.28449672, %v717_v10 }
 0x90d   : > { %v719_v12 = vmul.f32 %v2003_v2, %v718_v11 }
 0x90f   : > { %v720_v13 = vadd.f32 0.2548296, %v719_v12 }
 0x911   : > { %v721_v14 = vmul.f32 %v2003_v2, %v720_v13 }
 0x913   : > { %v726_v16 = vmul.f32 %v2005_v15, %v721_v14 }
 0x915   : > { %v727_v17 = vsub.f32 1.0, %v726_v16 }
 0x917   : > { %v728_v21 = vmul.f32 %v727_v17, %v707_v20 }
 0x919   : > { %v729_v23 = vadd.f32 1.0, %v728_v21 }
 0x91b   : > { %v730_v24 = vmul.f32 %v729_v23, %v704_v22 }
 0x91d   : > { %v731_v25 = vpack.c.bf16 %v730_v24, %v730_v24 }
 0x91f   : > { %1852 = vmatmul.mubr.msk.bf16.vlgmr.msra.gmra.mrb[8].mxu1 %vm761_vm6, %v731_v25 }
 0x920   : > { %1871 = vmatprep.mubr.msk.bf16.mxu1 %vm2037_vm1, %v2036_v8 }
 0x9f2   : > { %v799_v27 = vpop.f32.mrb[8].mxu1 }
 0x9f3   : > { %v800_v28 = vadd.f32 %v1692_v26, %v799_v27  ;;  %v1853_v29 = vpop.f32.mrb[9].mxu1 }
 0x9f4   : > { %v802_v30 = vpop.f32.mrb[10].mxu1 }
 0x9f5   : > { %v1854_v31 = vpop.f32.mrb[11].mxu1  ;;  %v805_v32 = vadd.f32 %v800_v28, %v642_v49 }
 0x9f7   : > { %v808_v33 = vsel %vm209_vm0, %v805_v32, 0.0 }
 0x9f8   : > { %809 = vadd.xlane.f32.xlu1 %v808_v33 }
 0xa85   : > { %v810_v34 = vpop.xlane.xlu1 %809 }
 0xa86   : > { %v811_v35 = vmul.f32 0.03125, %v810_v34 }
 0xa88   : > { %v812_v36 = vsub.f32 %v805_v32, %v811_v35 }
 0xa8a   : > { %v813_v37 = vmul.f32 %v812_v36, %v812_v36 }
 0xa8c   : > { %v814_v39 = vsel %vm209_vm0, %v813_v37, 0.0  ;;  %v1972_v37 = vld [vmem:[%s2405_s2 + $0x60] sm:$0xff]  }
 0xa8d   : > { %815 = vadd.xlane.f32.xlu1 %v814_v39  ;;  %v1973_v39 = vld [vmem:[%s2405_s2 + $0x68] sm:$0xff]  }
 0xb1a   : > { %v816_v18 = vpop.xlane.xlu1 %815 }
 0xb1b   : > { %v817_v42 = vmul.f32 0.03125, %v816_v18 }
 0xb1d   : > { %v818_v43 = vadd.f32 1e-12, %v817_v42 }
 0xb1f   : > { %2006 = vrsqrt.f32 %v818_v43 }
 0xb29   : > { %v2007_v44 = vpop.eup %2006 }
 0xb2a   : > { %v820_v46 = vmul.f32 %v2007_v44, %v812_v36 }
 0xb2c   : > { %v825_v48 = vmul.f32 %v1698_v45, %v820_v46 }
 0xb2e   : > { %v2239_v49 = vadd.f32 %v1699_v47, %v825_v48 }
 0xb30   : > { %v851_v50 = vpack.c.bf16 %v2239_v49, %v2239_v49 }
 0xb32   : > { %1860 = vmatmul.mubr.msk.bf16.vlgmr.msra.gmra.mrb[20].mxu0 %vm209_vm0, %v851_v50 }
 0xb33   : > { %1865 = vmatprep.mubr.msk.bf16.mxu0 %vm2037_vm1, %v2036_v8 }
 0xc05   : > { %v906_v52 = vpop.f32.mrb[20].mxu0 }
 0xc06   : > { %v907_v53 = vadd.f32 %v1700_v51, %v906_v52  ;;  %v1861_v54 = vpop.f32.mrb[21].mxu0  ;;  %v1708_v51 = vld [vmem:[%s2406_s3 + $0xb] ss:$0 sm:$0xff] }
 0xc07   : > { %v909_v55 = vpop.f32.mrb[22].mxu0 }
 0xc08   : > { %v912_v56 = vpack.c.bf16 %v907_v53, %v907_v53  ;;  %v1862_v57 = vpop.f32.mrb[23].mxu0 }
 0xc0a   : > { %1026 = vrot.lane.b32.xlu1 %v912_v56, %s2040_s7  ;;  %914 = vrot.lane.b32.xlu0 %v912_v56, %s2039_s6 }
 0xc0e   : > { %1024 = vrot.lane.b32.xlu1 %v912_v56, %s2038_s5 }
 0xc7c   : > { %v915_v58 = vpop.permute.xlu0 %914  ;;  %v1027_v60 = vpop.permute.xlu1 %1026 }
 0xc7d   : > { %v920_v59 = vsel %vm322_vm2, %v915_v58, 0  ;;  %v1032_v61 = vsel %vm322_vm2, %v1027_v60, 0 }
 0xc7e   : > { %1864 = vmatpush3.bf16.xpose.msra.mxu0 %v920_v59 }
 0xc7f   : > { %1875 = vmatprep.subr.bf16.mxu0 %v2036_v8 }
 0xc80   : > { %v1025_v62 = vpop.permute.xlu1 %1024 }
 0xc85   : > { %1866 = vmatmul.mubr.msk.bf16.vlgmr.msra.gmra.mrb[24].mxu0 %vm322_vm2, %v912_v56 }
 0xc86   : > { %1876 = vmatpush3.bf16.xpose.msra.mxu0 %v1032_v61  ;;  %1877 = vmatprep.mubr.msk.bf16.mxu0 %vm2037_vm1, %v2036_v8 }
 0xc87   : > { %1887 = vmatprep.subr.bf16.mxu0 %v2036_v8 }
 0xc8d   : > { %1878 = vmatmul.mubr.msk.bf16.vlgmr.msra.gmra.mrb[28].mxu0 %vm322_vm2, %v1025_v62 }
 0xc8e   : > { %1891 = vmatprep.mubr.msk.bf16.mxu0 %vm2037_vm1, %v2036_v8  ;;  %1888 = vmatpush3.bf16.msra.mxu0 %v1972_v37 }
 0xc8f   : > { %1889 = vmatprep.subr.bf16.mxu0 %v2036_v8 }
 0xc92   : > { %1890 = vmatpush3.bf16.msra.mxu0 %v1973_v39 }
 0xc93   : > { %1903 = vmatprep.subr.bf16.mxu0 %v2036_v8 }
 0xd58   : > { %v956_v63 = vpop.f32.mrb[24].mxu0 }
 0xd59   : > { %v962_v0 = vmul.f32 0.25, %v956_v63  ;;  %v1867_v1 = vpop.f32.mrb[25].mxu0 }
 0xd5a   : > { %v959_v2 = vpop.f32.mrb[26].mxu0  ;;  %v1975_v1 = vld [vmem:[%s2405_s2 + $0x78] sm:$0xff]  }
 0xd5b   : > { %v1868_v3 = vpop.f32.mrb[27].mxu0  ;;  %v963_v4 = vadd.f32 %v962_v0, %v2139_v38  ;;  %v1974_v0 = vld [vmem:[%s2405_s2 + $0x70] sm:$0xff]  }
 0xd5d   : > { %v964_v5 = vsel %vm377_vm3, %v963_v4, -inf }
 0xd5e   : > { %965 = vmax.xlane.f32.xlu0 %v964_v5  ;;  %v1712_v5 = vld [vmem:[%s2406_s3 + $0xc] ss:$0 sm:$0xff] }
 0xd60   : > { %v1068_v6 = vpop.f32.mrb[28].mxu0 }
 0xd61   : > { %v1074_v7 = vmul.f32 0.25, %v1068_v6  ;;  %v1879_v9 = vpop.f32.mrb[29].mxu0 }
 0xd62   : > { %v1071_v10 = vpop.f32.mrb[30].mxu0 }
 0xd63   : > { %v1880_v11 = vpop.f32.mrb[31].mxu0  ;;  %v1075_v12 = vadd.f32 %v1074_v7, %v2139_v38  ;;  %v1713_v7 = vld [vmem:[%s2406_s3 + $0xd] ss:$0 sm:$0xff] }
 0xd65   : > { %v1076_v13 = vsel %vm377_vm3, %v1075_v12, -inf }
 0xd66   : > { %1077 = vmax.xlane.f32.xlu1 %v1076_v13  ;;  %v1977_v13 = vld [vmem:[%s2405_s2 + $0x88] sm:$0xff]  }
 0xd77   : > { %976 = vrot.lane.b32.xlu1 %v912_v56, %s2042_s12 }
 0xdeb   : > { %v966_v14 = vpop.xlane.xlu0 %965 }
 0xdec   : > { %v967_v15 = vsub.f32 %v963_v4, %v966_v14  ;;  %v1978_v14 = vld [vmem:[%s2405_s2 + $0x90] sm:$0xff]  }
 0xdee   : > { %v968_v16 = vmul.f32 1.442695, %v967_v15  ;;  %v1979_v15 = vld [vmem:[%s2405_s2 + $0x98] sm:$0xff]  }
 0xdf0   : > { %2008 = vpow2.f32 %v968_v16  ;;  %v1714_v16 = vld [vmem:[%s2406_s3 + $0xe] ss:$0 sm:$0xff] }
 0xdf3   : > { %v1078_v17 = vpop.xlane.xlu1 %1077 }
 0xdf4   : > { %v1079_v20 = vsub.f32 %v1075_v12, %v1078_v17  ;;  %v1976_v12 = vld [vmem:[%s2405_s2 + $0x80] sm:$0xff]  }
 0xdf6   : > { %v1080_v21 = vmul.f32 1.442695, %v1079_v20 }
 0xdf7   : > { %v977_v22 = vpop.permute.xlu1 %976 }
 0xdf8   : > { %2010 = vpow2.f32 %v1080_v21  ;;  %v982_v23 = vsel %vm395_vm4, %v977_v22, 0 }
 0xdf9   : > { %1870 = vmatpush3.bf16.msra.mxu1 %v982_v23 }
 0xdfa   : > { %v2009_v24 = vpop.eup %2008  ;;  %1881 = vmatprep.subr.bf16.mxu1 %v2036_v8 }
 0xdfb   : > { %v970_v38 = vsel %vm377_vm3, %v2009_v24, 0.0 }
 0xdfc   : > { %971 = vadd.xlane.f32.xlu0 %v970_v38 }
 0xe02   : > { %v2011_v25 = vpop.eup %2010 }
 0xe03   : > { %v1082_v26 = vsel %vm377_vm3, %v2011_v25, 0.0 }
 0xe04   : > { %1083 = vadd.xlane.f32.xlu0 %v1082_v26 }
 0xe1a   : > { %1088 = vrot.lane.b32.xlu0 %v912_v56, %s2041_s11 }
 0xe89   : > { %v972_v27 = vpop.xlane.xlu0 %971 }
 0xe8a   : > { %2012 = vrcp.f32 %v972_v27 }
 0xe91   : > { %v1084_v28 = vpop.xlane.xlu0 %1083 }
 0xe92   : > { %2014 = vrcp.f32 %v1084_v28 }
 0xe94   : > { %v2013_v29 = vpop.eup %2012 }
 0xe95   : > { %v974_v30 = vmul.f32 %v2013_v29, %v2009_v24  ;;  %v1089_v31 = vpop.permute.xlu0 %1088 }
 0xe96   : > { %v1094_v33 = vsel %vm395_vm4, %v1089_v31, 0 }
 0xe97   : > { %v975_v32 = vpack.c.bf16 %v974_v30, %v974_v30 }
 0xe99   : > { %1872 = vmatmul.mubr.msk.bf16.vlgmr.msra.gmra.mrb[12].mxu1 %vm377_vm3, %v975_v32 }
 0xe9a   : > { %1882 = vmatpush3.bf16.msra.mxu1 %v1094_v33  ;;  %1883 = vmatprep.mubr.msk.bf16.mxu1 %vm2037_vm1, %v2036_v8 }
 0xe9b   : > { %1895 = vmatprep.subr.bf16.mxu1 %v2036_v8 }
 0xe9c   : > { %v2015_v34 = vpop.eup %2014 }
 0xe9d   : > { %v1086_v35 = vmul.f32 %v2015_v34, %v2011_v25 }
 0xe9f   : > { %v1087_v36 = vpack.c.bf16 %v1086_v35, %v1086_v35 }
 0xea1   : > { %1884 = vmatmul.mubr.msk.bf16.vlgmr.msra.gmra.mrb[16].mxu1 %vm377_vm3, %v1087_v36 }
 0xea2   : > { %1899 = vmatprep.mubr.msk.bf16.mxu1 %vm2037_vm1, %v2036_v8  ;;  %1896 = vmatpush3.bf16.msra.mxu1 %v1974_v0  ;;  %v1981_v0 = vld [vmem:[%s2405_s2 + $0xa8] sm:$0xff]  }
 0xea3   : > { %1897 = vmatprep.subr.bf16.mxu1 %v2036_v8 }
 0xea6   : > { %1898 = vmatpush3.bf16.msra.mxu1 %v1975_v1 }
 0xea7   : > { %1915 = vmatprep.subr.bf16.mxu1 %v2036_v8 }
 0xf6c   : > { %v1018_v40 = vpop.f32.mrb[12].mxu1 }
 0xf6d   : > { %v1873_v41 = vpop.f32.mrb[13].mxu1 }
 0xf6e   : > { %v1021_v18 = vpop.f32.mrb[14].mxu1 }
 0xf6f   : > { %v1874_v42 = vpop.f32.mrb[15].mxu1 }
 0xf74   : > { %v1130_v43 = vpop.f32.mrb[16].mxu1 }
 0xf75   : > { %1137 = vrot.lane.b32.xlu1 %v1130_v43, %s2043_s19  ;;  %v1885_v44 = vpop.f32.mrb[17].mxu1 }
 0xf76   : > { %v1133_v45 = vpop.f32.mrb[18].mxu1 }
 0xf77   : > { %v1886_v46 = vpop.f32.mrb[19].mxu1 }
 0xfe7   : > { %v1138_v47 = vpop.permute.xlu1 %1137 }
 0xfe8   : > { %v1140_v48 = vsel %vm322_vm2, %v1018_v40, %v1138_v47 }
 0xfe9   : > { %v1141_v50 = vpack.c.bf16 %v1140_v48, %v1140_v48 }
 0xfeb   : > { %1892 = vmatmul.mubr.msk.bf16.vlgmr.msra.gmra.mrb[32].mxu0 %vm209_vm0, %v1141_v50  ;;  %v1718_v50 = vld [vmem:[%s2406_s3 + $0xf] ss:$0 sm:$0xff] }
 0xfec   : > { %1911 = vmatprep.mubr.msk.bf16.mxu0 %vm2037_vm1, %v2036_v8  ;;  %1904 = vmatpush3.bf16.msra.mxu0 %v1976_v12  ;;  %v1983_v12 = vld [vmem:[%s2405_s2 + $0xb8] sm:$0xff]  }
 0xfed   : > { %1905 = vmatprep.subr.bf16.mxu0 %v2036_v8 }
 0xff0   : > { %1906 = vmatpush3.bf16.msra.mxu0 %v1977_v13  ;;  %v1984_v13 = vld [vmem:[%s2405_s2 + $0xc0] sm:$0xff]  }
 0xff1   : > { %1907 = vmatprep.subr.bf16.mxu0 %v2036_v8 }
 0xff4   : > { %1908 = vmatpush3.bf16.msra.mxu0 %v1978_v14  ;;  %v1985_v14 = vld [vmem:[%s2405_s2 + $0xc8] sm:$0xff]  }
 0xff5   : > { %1909 = vmatprep.subr.bf16.mxu0 %v2036_v8 }
 0xff8   : > { %1910 = vmatpush3.bf16.msra.mxu0 %v1979_v15  ;;  %v1986_v15 = vld [vmem:[%s2405_s2 + $0xd0] sm:$0xff]  }
0x10be   : > { %v1196_v52 = vpop.f32.mrb[32].mxu0 }
0x10bf   : > { %v1197_v53 = vadd.f32 %v1708_v51, %v1196_v52  ;;  %v1893_v54 = vpop.f32.mrb[33].mxu0 }
0x10c0   : > { %v1199_v55 = vpop.f32.mrb[34].mxu0 }
0x10c1   : > { %v1894_v56 = vpop.f32.mrb[35].mxu0  ;;  %v1202_v57 = vadd.f32 %v1197_v53, %v2239_v49 }
0x10c3   : > { %v1205_v58 = vsel %vm209_vm0, %v1202_v57, 0.0 }
0x10c4   : > { %1206 = vadd.xlane.f32.xlu1 %v1205_v58 }
0x1151   : > { %v1207_v59 = vpop.xlane.xlu1 %1206 }
0x1152   : > { %v1208_v60 = vmul.f32 0.03125, %v1207_v59 }
0x1154   : > { %v1209_v61 = vsub.f32 %v1202_v57, %v1208_v60 }
0x1156   : > { %v1210_v62 = vmul.f32 %v1209_v61, %v1209_v61 }
0x1158   : > { %v1211_v63 = vsel %vm209_vm0, %v1210_v62, 0.0 }
0x1159   : > { %1212 = vadd.xlane.f32.xlu0 %v1211_v63  ;;  %v1980_v63 = vld [vmem:[%s2405_s2 + $0xa0] sm:$0xff]  }
0x11e6   : > { %v1213_v49 = vpop.xlane.xlu0 %1212 }
0x11e7   : > { %v1214_v2 = vmul.f32 0.03125, %v1213_v49 }
0x11e9   : > { %v1215_v3 = vadd.f32 1e-12, %v1214_v2 }
0x11eb   : > { %2016 = vrsqrt.f32 %v1215_v3 }
0x11f5   : > { %v2017_v4 = vpop.eup %2016 }
0x11f6   : > { %v1217_v6 = vmul.f32 %v2017_v4, %v1209_v61  ;;  %v1724_v4 = vld [vmem:[%s2406_s3 + $0x10] ss:$0 sm:$0xff] }
0x11f8   : > { %v1222_v9 = vmul.f32 %v1712_v5, %v1217_v6  ;;  %v1725_v6 = vld [vmem:[%s2406_s3 + $0x11] ss:$0 sm:$0xff] }
0x11fa   : > { %v1227_v10 = vadd.f32 %v1713_v7, %v1222_v9 }
0x11fc   : > { %v1228_v11 = vpack.c.bf16 %v1227_v10, %v1227_v10 }
0x11fe   : > { %1900 = vmatmul.mubr.msk.bf16.vlgmr.msra.gmra.mrb[20].mxu1 %vm209_vm0, %v1228_v11  ;;  %v1982_v11 = vld [vmem:[%s2405_s2 + $0xb0] sm:$0xff]  }
0x11ff   : > { %1919 = vmatprep.mubr.msk.bf16.mxu1 %vm2037_vm1, %v2036_v8  ;;  %1916 = vmatpush3.bf16.msra.mxu1 %v1980_v63 }
0x1200   : > { %1917 = vmatprep.subr.bf16.mxu1 %v2036_v8 }
0x1203   : > { %1918 = vmatpush3.bf16.msra.mxu1 %v1981_v0 }
0x1204   : > { %1923 = vmatprep.subr.bf16.mxu1 %v2036_v8 }
0x12d1   : > { %v1283_v17 = vpop.f32.mrb[20].mxu1 }
0x12d2   : > { %v1284_v20 = vadd.f32 %v1714_v16, %v1283_v17  ;;  %v1901_v21 = vpop.f32.mrb[21].mxu1  ;;  %v1987_v16 = vld [vmem:[%s2405_s2 + $0xd8] sm:$0xff]   ;;  %v1988_v17 = vld [vmem:[%s2405_s2 + $0xe0] sm:$0xff]  }
0x12d3   : > { %v1286_v22 = vpop.f32.mrb[22].mxu1  ;;  %v1436_v21 = vld [vmem:[%s2406_s3 + $0x12] sm:$0x1] }
0x12d4   : > { %v1290_v23 = vmul.f32 0.70710677, %v1284_v20  ;;  %v1902_v24 = vpop.f32.mrb[23].mxu1  ;;  %v1289_v45 = vmul.f32 0.5, %v1284_v20  ;;  %v1989_v20 = vld [vmem:[%s2405_s2 + $0xe8] sm:$0xff]  }
0x12d6   : > { %v1293_v38 = vand.u32 2147483647, %v1290_v23  ;;  %vm1291_vm7 = vcmp.ge.f32.partialorder %v1290_v23, 0.0 }
0x12d7   : > { %v1292_v43 = vsel %vm1291_vm7, 1.0, %v2044_v19 }
0x12d8   : > { %v1294_v25 = vmul.f32 0.3275911, %v1293_v38  ;;  %v1307_v27 = vsub.f32 0.0, %v1293_v38 }
0x12da   : > { %v1295_v26 = vadd.f32 1.0, %v1294_v25  ;;  %v1308_v29 = vmul.f32 %v1307_v27, %v1293_v38 }
0x12dc   : > { %2018 = vrcp.f32 %v1295_v26  ;;  %v1309_v32 = vmul.f32 1.442695, %v1308_v29 }
0x12de   : > { %2020 = vpow2.f32 %v1309_v32 }
0x12e6   : > { %v2019_v28 = vpop.eup %2018 }
0x12e7   : > { %v1298_v30 = vmul.f32 1.0614054, %v2019_v28 }
0x12e8   : > { %v2021_v41 = vpop.eup %2020 }
0x12e9   : > { %v1299_v31 = vadd.f32 -1.4531521, %v1298_v30 }
0x12eb   : > { %v1300_v33 = vmul.f32 %v2019_v28, %v1299_v31 }
0x12ed   : > { %v1301_v34 = vadd.f32 1.4214138, %v1300_v33 }
0x12ef   : > { %v1302_v35 = vmul.f32 %v2019_v28, %v1301_v34 }
0x12f1   : > { %v1303_v36 = vadd.f32 -0.28449672, %v1302_v35 }
0x12f3   : > { %v1304_v37 = vmul.f32 %v2019_v28, %v1303_v36 }
0x12f5   : > { %v1305_v39 = vadd.f32 0.2548296, %v1304_v37 }
0x12f7   : > { %v1306_v40 = vmul.f32 %v2019_v28, %v1305_v39 }
0x12f9   : > { %v1311_v18 = vmul.f32 %v2021_v41, %v1306_v40 }
0x12fb   : > { %v1312_v42 = vsub.f32 1.0, %v1311_v18 }
0x12fd   : > { %v1313_v44 = vmul.f32 %v1312_v42, %v1292_v43 }
0x12ff   : > { %v1314_v46 = vadd.f32 1.0, %v1313_v44 }
0x1301   : > { %v1315_v47 = vmul.f32 %v1314_v46, %v1289_v45 }
0x1303   : > { %v1316_v48 = vpack.c.bf16 %v1315_v47, %v1315_v47 }
0x1305   : > { %1912 = vmatmul.mubr.msk.bf16.vlgmr.msra.gmra.mrb[36].mxu0 %vm761_vm6, %v1316_v48 }
0x13d8   : > { %v1383_v51 = vpop.f32.mrb[36].mxu0 }
0x13d9   : > { %v1384_v52 = vadd.f32 %v1718_v50, %v1383_v51  ;;  %v1913_v53 = vpop.f32.mrb[37].mxu0 }
0x13da   : > { %v1386_v54 = vpop.f32.mrb[38].mxu0 }
0x13db   : > { %v1914_v55 = vpop.f32.mrb[39].mxu0  ;;  %v1389_v56 = vadd.f32 %v1384_v52, %v1227_v10  ;;  %v1520_v52 = vld [vmem:[%s2406_s3 + $0x13] sm:$0x1] }
0x13dd   : > { %v1392_v57 = vsel %vm209_vm0, %v1389_v56, 0.0 }
0x13de   : > { %1393 = vadd.xlane.f32.xlu0 %v1392_v57 }
0x146b   : > { %v1394_v58 = vpop.xlane.xlu0 %1393 }
0x146c   : > { %v1395_v59 = vmul.f32 0.03125, %v1394_v58 }
0x146e   : > { %v1396_v60 = vsub.f32 %v1389_v56, %v1395_v59 }
0x1470   : > { %v1397_v61 = vmul.f32 %v1396_v60, %v1396_v60 }
0x1472   : > { %v1398_v62 = vsel %vm209_vm0, %v1397_v61, 0.0 }
0x1473   : > { %1399 = vadd.xlane.f32.xlu1 %v1398_v62 }
0x1500   : > { %v1400_v1 = vpop.xlane.xlu1 %1399 }
0x1501   : > { %v1401_v49 = vmul.f32 0.03125, %v1400_v1 }
0x1503   : > { %v1402_v2 = vadd.f32 1e-12, %v1401_v49 }
0x1505   : > { %2022 = vrsqrt.f32 %v1402_v2 }
0x150f   : > { %v2023_v3 = vpop.eup %2022 }
0x1510   : > { %v1404_v5 = vmul.f32 %v2023_v3, %v1396_v60 }
0x1512   : > { %v1409_v7 = vmul.f32 %v1724_v4, %v1404_v5 }
0x1514   : > { %v1414_v9 = vadd.f32 %v1725_v6, %v1409_v7 }
0x1516   : > { %v1435_v10 = vpack.c.bf16 %v1414_v9, %v1414_v9 }
0x1518   : > { %1920 = vmatmul.mubr.msk.bf16.vlgmr.msra.gmra.mrb[24].mxu1 %vm209_vm0, %v1435_v10 }
0x1519   : > { %1939 = vmatprep.mubr.msk.bf16.mxu1 %vm2037_vm1, %v2036_v8  ;;  %1924 = vmatpush3.bf16.msra.mxu1 %v1982_v11 }
0x151a   : > { %1925 = vmatprep.subr.bf16.mxu1 %v2036_v8 }
0x151d   : > { %1926 = vmatpush3.bf16.msra.mxu1 %v1983_v12 }
0x151e   : > { %1927 = vmatprep.subr.bf16.mxu1 %v2036_v8 }
0x1521   : > { %1928 = vmatpush3.bf16.msra.mxu1 %v1984_v13 }
0x1522   : > { %1929 = vmatprep.subr.bf16.mxu1 %v2036_v8 }
0x1525   : > { %1930 = vmatpush3.bf16.msra.mxu1 %v1985_v14 }
0x1526   : > { %1931 = vmatprep.subr.bf16.mxu1 %v2036_v8 }
0x1529   : > { %1932 = vmatpush3.bf16.msra.mxu1 %v1986_v15 }
0x152a   : > { %1933 = vmatprep.subr.bf16.mxu1 %v2036_v8 }
0x152d   : > { %1934 = vmatpush3.bf16.msra.mxu1 %v1987_v16 }
0x152e   : > { %1935 = vmatprep.subr.bf16.mxu1 %v2036_v8 }
0x1531   : > { %1936 = vmatpush3.bf16.msra.mxu1 %v1988_v17 }
0x1532   : > { %1937 = vmatprep.subr.bf16.mxu1 %v2036_v8 }
0x1535   : > { %1938 = vmatpush3.bf16.msra.mxu1 %v1989_v20 }
0x15eb   : > { %v1486_v22 = vpop.f32.mrb[24].mxu1 }
0x15ec   : > { %v1487_v23 = vadd.f32 %v1486_v22, %v1436_v21  ;;  %v1921_v24 = vpop.f32.mrb[25].mxu1 }
0x15ed   : > { %v1489_v38 = vpop.f32.mrb[26].mxu1 }
0x15ee   : > { %v1493_v25 = vmul.f32 0.70710677, %v1487_v23  ;;  %v1922_v26 = vpop.f32.mrb[27].mxu1  ;;  %v1492_v47 = vmul.f32 0.5, %v1487_v23 }
0x15f0   : > { %v1496_v27 = vand.u32 2147483647, %v1493_v25  ;;  %vm1494_vm8 = vcmp.ge.f32.partialorder %v1493_v25, 0.0 }
0x15f1   : > { %v1495_v45 = vsel %vm1494_vm8, 1.0, %v2044_v19 }
0x15f2   : > { %v1497_v28 = vmul.f32 0.3275911, %v1496_v27  ;;  %v1510_v8 = vsub.f32 0.0, %v1496_v27 }
0x15f4   : > { %v1498_v29 = vadd.f32 1.0, %v1497_v28  ;;  %v1511_v31 = vmul.f32 %v1510_v8, %v1496_v27 }
0x15f6   : > { %2024 = vrcp.f32 %v1498_v29  ;;  %v1512_v34 = vmul.f32 1.442695, %v1511_v31 }
0x15f8   : > { %2026 = vpow2.f32 %v1512_v34 }
0x1600   : > { %v2025_v30 = vpop.eup %2024 }
0x1601   : > { %v1501_v32 = vmul.f32 1.0614054, %v2025_v30 }
0x1602   : > { %v2027_v42 = vpop.eup %2026 }
0x1603   : > { %v1502_v33 = vadd.f32 -1.4531521, %v1501_v32 }
0x1605   : > { %v1503_v35 = vmul.f32 %v2025_v30, %v1502_v33 }
0x1607   : > { %v1504_v36 = vadd.f32 1.4214138, %v1503_v35 }
0x1609   : > { %v1505_v37 = vmul.f32 %v2025_v30, %v1504_v36 }
0x160b   : > { %v1506_v39 = vadd.f32 -0.28449672, %v1505_v37 }
0x160d   : > { %v1507_v40 = vmul.f32 %v2025_v30, %v1506_v39 }
0x160f   : > { %v1508_v41 = vadd.f32 0.2548296, %v1507_v40 }
0x1611   : > { %v1509_v18 = vmul.f32 %v2025_v30, %v1508_v41 }
0x1613   : > { %v1514_v43 = vmul.f32 %v2027_v42, %v1509_v18 }
0x1615   : > { %v1515_v44 = vsub.f32 1.0, %v1514_v43 }
0x1617   : > { %v1516_v46 = vmul.f32 %v1515_v44, %v1495_v45 }
0x1619   : > { %v1517_v48 = vadd.f32 1.0, %v1516_v46 }
0x161b   : > { %v1518_v50 = vmul.f32 %v1517_v48, %v1492_v47 }
0x161d   : > { %v1519_v51 = vpack.c.bf16 %v1518_v50, %v1518_v50 }
0x161f   : > { %1940 = vmatmul.mubr.bf16.vlgmr.msra.gmra.mrb[28].mxu1 %v1519_v51 }
0x16f2   : > { %v1603_v53 = vpop.f32.mrb[28].mxu1 }
0x16f3   : > { %v1604_v54 = vadd.f32 %v1603_v53, %v1520_v52  ;;  %v1941_v55 = vpop.f32.mrb[29].mxu1 }
0x16f4   : > { %v1606_v56 = vpop.f32.mrb[30].mxu1 }
0x16f5   : > { %1609 = vst [vmem:[%s204_s17] sm:$0x1] %v1604_v54  ;;  %v1942_v19 = vpop.f32.mrb[31].mxu1 }
0x16f6 PF: > { %s14_s15 = sadd.s32 1, %s2034_s15  }
0x16f7   : > { %p11_p4 = scmp.ge.s32.totalorder %s14_s15, 4  }
0x16f9   :  { %13 = sbr.rel (!%p11_p4) target bundleno = 1 (0x1), region = 69 }

</bundles_post_ra>
